<compile_context>
chip_gen: v5e
topology: v5e:2x2
jax: 0.10.0
libtpu: 0.0.40
codegen_flags: <defaults>
</compile_context>

<pallas_src>
import jax
import jax.numpy as jnp
from jax.experimental import pallas as pl
from jax.experimental.pallas import tpu as pltpu

LANE = 128      # vreg lane width / MXU column granularity
SUBLANE = 8     # vreg sublane count (f32)
MAX_TB = 512    # max batch-tile rows


def _round_up(x: int, m: int) -> int:
    return ((x + m - 1) // m) * m


def _pick_batch_tile(B: int) -> int:
    """Sublane-aligned batch tile; >=2 tiles when the batch is big enough so
    both v7x TensorCores get work and DMA/compute pipelining exists."""
    B = max(B, 1)
    if B <= SUBLANE:
        return SUBLANE
    half = _round_up(-(-B // 2), SUBLANE)
    return min(half, MAX_TB)


def _default_bf16_epilogue() -> bool:
    """bf16 bias-add/tanh only on chips with bf16 VPU/EUP (not v5e/v4/older)."""
    try:
        kind = jax.devices()[0].device_kind.lower()
    except Exception:
        return False
    for old in ("v2", "v3", "v4", "v5 lite", "v5e", "v5lite"):
        if old in kind:
            return False
    return True


# ----------------------------------------------------------------------------
# Fused kernel: refs = (x, bias_stack, w0, w1, ..., out)
# ----------------------------------------------------------------------------
def _make_fused_mlp_kernel(n_layers, out_pads, bf16_epilogue, f32_highest):
    def kernel(*refs):
        x_ref = refs[0]
        b_ref = refs[1]                       # (n_layers, max_out_pad) f32
        w_refs = refs[2:2 + n_layers]         # each (in_pad, out_pad)
        o_ref = refs[2 + n_layers]

        h = x_ref[...]                        # (TB, in_pad), compute dtype
        for i in range(n_layers):             # statically unrolled
            w_ref = w_refs[i]
            dot_kwargs = dict(preferred_element_type=jnp.float32)
            if f32_highest:
                dot_kwargs["precision"] = jax.lax.Precision.HIGHEST
            acc = jnp.dot(h.astype(w_ref.dtype), w_ref[...], **dot_kwargs)
            out_p = out_pads[i]
            b = b_ref[i:i + 1, 0:out_p]       # (1, out_p) f32, broadcasts
            z = acc + b
            if bf16_epilogue:
                h = jnp.tanh(z.astype(jnp.bfloat16))   # EUP bf16, feeds MXU
            else:
                h = jnp.tanh(z)                        # f32 epilogue (v5e)
        o_ref[...] = h.astype(o_ref.dtype)
    return kernel


# ----------------------------------------------------------------------------
# Parameter init (PyTorch nn.Linear-style) and one-time preparation
# ----------------------------------------------------------------------------
def init_modular_nn_params(key, input_size, output_size, layer_sizes=()):
    """[(W (Out,In), b (Out,)), ...] exactly mirroring the nn.Module."""
    dims = [input_size] + list(layer_sizes) + [output_size]
    params = []
    for i in range(len(dims) - 1):
        fan_in, fan_out = dims[i], dims[i + 1]
        key, kw, kb = jax.random.split(key, 3)
        bound = 1.0 / jnp.sqrt(fan_in)
        w = jax.random.uniform(kw, (fan_out, fan_in), jnp.float32, -bound, bound)
        b = jax.random.uniform(kb, (fan_out,), jnp.float32, -bound, bound)
        params.append((w, b))
    return params


def prepare_params(params, compute_dtype=jnp.bfloat16):
    """One-time: transpose to (In, Out), zero-pad to multiples of 128, cast
    weights to the MXU compute dtype.  Bias stays f32, lane-padded."""
    prepped = []
    for w, b in params:
        out_f, in_f = w.shape
        in_p, out_p = _round_up(in_f, LANE), _round_up(out_f, LANE)
        w_t = jnp.zeros((in_p, out_p), compute_dtype)
        w_t = w_t.at[:in_f, :out_f].set(jnp.transpose(w).astype(compute_dtype))
        b_p = jnp.zeros((1, out_p), jnp.float32)
        b_p = b_p.at[0, :out_f].set(b.astype(jnp.float32))
        prepped.append({"w": w_t, "b": b_p, "in_f": in_f, "out_f": out_f})
    for a, c in zip(prepped[:-1], prepped[1:]):
        assert a["w"].shape[1] == c["w"].shape[0], "layer size mismatch"
    return prepped


# ----------------------------------------------------------------------------
# Forward builder: returns a jitted callable x -> y
# ----------------------------------------------------------------------------
def build_modular_nn_forward(prepped, *, single_buffer_resident=True,
                             bf16_epilogue=None):
    n_layers = len(prepped)
    weights = tuple(p["w"] for p in prepped)
    compute_dtype = weights[0].dtype
    in_f0 = prepped[0]["in_f"]
    out_f_last = prepped[-1]["out_f"]
    in_p0 = weights[0].shape[0]
    out_pads = tuple(int(w.shape[1]) for w in weights)
    max_out_p = max(out_pads)

    # Single consolidated bias operand: (n_layers, max_out_pad) f32.
    bias_stack = jnp.zeros((n_layers, max_out_p), jnp.float32)
    for i, p in enumerate(prepped):
        bias_stack = bias_stack.at[i, :p["b"].shape[1]].set(p["b"][0])

    if bf16_epilogue is None:
        bf16_epilogue = (compute_dtype == jnp.bfloat16) and _default_bf16_epilogue()
    f32_highest = (compute_dtype == jnp.float32)

    weight_bytes = sum(int(w.size) * w.dtype.itemsize for w in weights)
    bias_bytes = int(bias_stack.size) * 4
    # TODO(synk): if weight_bytes exceeds ~24 MiB (v7x all-resident budget),
    # tile the widest layer over its output dim (extra grid axis) or feed it
    # via pltpu.emit_pipeline over K / fp8 weights instead of this resident path.

    def fwd(x, ws, b_all):
        B = x.shape[0]
        tb = _pick_batch_tile(B)
        b_pad = _round_up(B, tb)

        x_p = (jnp.zeros((b_pad, in_p0), compute_dtype)
               .at[:B, :in_f0].set(x.astype(compute_dtype)))

        resident_kwargs = {}
        if single_buffer_resident:
            # Constant index_map -> one buffer is enough; halves resident VMEM.
            resident_kwargs["pipeline_mode"] = pl.Buffered(1)

        in_specs = [pl.BlockSpec((tb, in_p0), lambda i: (i, 0)),
                    pl.BlockSpec(b_all.shape, lambda i: (0, 0),
                                 **resident_kwargs)]
        for w in ws:
            in_specs.append(pl.BlockSpec(w.shape, lambda i: (0, 0),
                                         **resident_kwargs))

        out_p = out_pads[-1]
        x_bytes = jnp.dtype(compute_dtype).itemsize

        # Scoped-VMEM budget: double-buffered x/out tiles + resident weights
        # + bias + a few f32 activation temporaries, with 1.5x headroom.
        act_width = max(in_p0, max_out_p)
        est = (2 * tb * in_p0 * x_bytes
               + 2 * tb * out_p * 4
               + weight_bytes + bias_bytes
               + 4 * tb * act_width * 4)
        vmem_limit = int(min(max(int(est * 1.5), 4 << 20), 64 << 20))

        flops = 2 * b_pad * sum(int(w.shape[0]) * int(w.shape[1]) for w in ws)
        transcendentals = b_pad * sum(out_pads)
        bytes_accessed = (b_pad * in_p0 * x_bytes + b_pad * out_p * 4
                          + weight_bytes + bias_bytes)

        y_p = pl.pallas_call(
            _make_fused_mlp_kernel(n_layers, out_pads, bf16_epilogue,
                                   f32_highest),
            out_shape=jax.ShapeDtypeStruct((b_pad, out_p), jnp.float32),
            grid=(b_pad // tb,),
            in_specs=in_specs,
            out_specs=pl.BlockSpec((tb, out_p), lambda i: (i, 0)),
            compiler_params=pltpu.CompilerParams(
                dimension_semantics=("parallel",),   # batch tiles across TCs
                vmem_limit_bytes=vmem_limit,
            ),
            cost_estimate=pl.CostEstimate(
                flops=flops,
                transcendentals=transcendentals,
                bytes_accessed=bytes_accessed,
            ),
        )(x_p, b_all, *ws)

        return y_p[:B, :out_f_last]

    fwd_jit = jax.jit(fwd)
    return lambda x: fwd_jit(x, weights, bias_stack)


def run_forward(x, prepped):
    """Forward with a graceful fallback if pipeline_mode=pl.Buffered(1) is not
    supported by the installed JAX version."""
    try:
        return jax.block_until_ready(build_modular_nn_forward(prepped)(x))
    except Exception:
        return jax.block_until_ready(
            build_modular_nn_forward(prepped, single_buffer_resident=False)(x))


# ----------------------------------------------------------------------------
# Pure-JAX reference (PyTorch semantics: tanh(x @ W.T + b) per layer)
# ----------------------------------------------------------------------------
def _reference_forward(x, params):
    out = x
    for w, b in params:
        out = jnp.tanh(jnp.dot(out, w.T,
                               precision=jax.lax.Precision.HIGHEST) + b)
    return out


if __name__ == "__main__":
    key = jax.random.PRNGKey(0)

    batch = 8
    input_size = 32
    layer_sizes = (64, 48)
    output_size = 16

    key, kx, kx2, kp = jax.random.split(key, 4)
    x = jax.random.normal(kx, (batch, input_size), jnp.float32)
    params = init_modular_nn_params(kp, input_size, output_size, layer_sizes)
    y_ref = _reference_forward(x, params)

    # f32 compute path (precision=HIGHEST in-kernel): tight check vs reference.
    prepped_f32 = prepare_params(params, compute_dtype=jnp.float32)
    y_f32 = run_forward(x, prepped_f32)
    assert y_f32.shape == (batch, output_size)
    assert jnp.allclose(y_f32, y_ref, atol=1e-5, rtol=1e-5), "f32 mismatch"

    # bf16 MXU feed (recommended fast path): looser tolerance.
    prepped_bf16 = prepare_params(params, compute_dtype=jnp.bfloat16)
    y_bf16 = run_forward(x, prepped_bf16)
    assert y_bf16.shape == (batch, output_size)
    assert jnp.allclose(y_bf16, y_ref, atol=3e-2, rtol=0.0), "bf16 mismatch"

    # Larger batch: exercises the multi-tile grid path + ragged final tile.
    x2 = jax.random.normal(kx2, (24, input_size), jnp.float32)
    y2 = run_forward(x2, prepped_bf16)
    y2_ref = _reference_forward(x2, params)
    assert y2.shape == (24, output_size)
    assert jnp.allclose(y2, y2_ref, atol=3e-2, rtol=0.0), "multi-tile mismatch"

    print("KERNEL_OK")
</pallas_src>

<mosaic_0001>
module attributes {stable_mosaic.version = 11 : i64} {
  func.func @kernel(%arg0: i32, %arg1: memref<8x128xf32, #tpu.memory_space<vmem>>, %arg2: memref<3x128xf32, #tpu.memory_space<vmem>>, %arg3: memref<128x128xf32, #tpu.memory_space<vmem>>, %arg4: memref<128x128xf32, #tpu.memory_space<vmem>>, %arg5: memref<128x128xf32, #tpu.memory_space<vmem>>, %arg6: memref<8x128xf32, #tpu.memory_space<vmem>>) attributes {dimension_semantics = [#tpu.dimension_semantics<parallel>], iteration_bounds = array<i64: 1>, scalar_prefetch = 0 : i64, scratch_operands = 0 : i64, tpu.core_type = #tpu.core_type<tc>, window_params = [{transform_indices = @transform_0, window_bounds = array<i64: 8, 128>}, {pipeline_mode = #tpu.pipeline_mode<synchronous>, transform_indices = @transform_1, window_bounds = array<i64: 3, 128>}, {pipeline_mode = #tpu.pipeline_mode<synchronous>, transform_indices = @transform_2, window_bounds = array<i64: 128, 128>}, {pipeline_mode = #tpu.pipeline_mode<synchronous>, transform_indices = @transform_3, window_bounds = array<i64: 128, 128>}, {pipeline_mode = #tpu.pipeline_mode<synchronous>, transform_indices = @transform_4, window_bounds = array<i64: 128, 128>}, {transform_indices = @transform_5, window_bounds = array<i64: 8, 128>}]} {
    %c0 = arith.constant 0 : index
    %c0_0 = arith.constant 0 : index
    %0 = vector.load %arg1[%c0, %c0_0] : memref<8x128xf32, #tpu.memory_space<vmem>>, vector<8x128xf32>
    %c0_1 = arith.constant 0 : index
    %c0_2 = arith.constant 0 : index
    %1 = vector.load %arg3[%c0_1, %c0_2] : memref<128x128xf32, #tpu.memory_space<vmem>>, vector<128x128xf32>
    %cst = arith.constant dense<0.000000e+00> : vector<8x128xf32>
    %2 = tpu.matmul %0, %1, %cst {dimension_numbers = #tpu.dot_dimension_numbers<[1], [0], [0], [1], [0, 0, 1, 1], [], []>, precision = #tpu.contract_precision<fp32>} : vector<8x128xf32>, vector<128x128xf32>, vector<8x128xf32> -> vector<8x128xf32>
    %c0_3 = arith.constant 0 : index
    %c0_4 = arith.constant 0 : index
    %3 = vector.load %arg2[%c0_3, %c0_4] : memref<3x128xf32, #tpu.memory_space<vmem>>, vector<1x128xf32>
    %4 = vector.broadcast %3 : vector<1x128xf32> to vector<8x128xf32>
    %5 = arith.addf %2, %4 : vector<8x128xf32>
    %6 = math.tanh %5 : vector<8x128xf32>
    %c0_5 = arith.constant 0 : index
    %c0_6 = arith.constant 0 : index
    %7 = vector.load %arg4[%c0_5, %c0_6] : memref<128x128xf32, #tpu.memory_space<vmem>>, vector<128x128xf32>
    %cst_7 = arith.constant dense<0.000000e+00> : vector<8x128xf32>
    %8 = tpu.matmul %6, %7, %cst_7 {dimension_numbers = #tpu.dot_dimension_numbers<[1], [0], [0], [1], [0, 0, 1, 1], [], []>, precision = #tpu.contract_precision<fp32>} : vector<8x128xf32>, vector<128x128xf32>, vector<8x128xf32> -> vector<8x128xf32>
    %c1 = arith.constant 1 : index
    %c0_8 = arith.constant 0 : index
    %9 = vector.load %arg2[%c1, %c0_8] : memref<3x128xf32, #tpu.memory_space<vmem>>, vector<1x128xf32>
    %10 = vector.broadcast %9 : vector<1x128xf32> to vector<8x128xf32>
    %11 = arith.addf %8, %10 : vector<8x128xf32>
    %12 = math.tanh %11 : vector<8x128xf32>
    %c0_9 = arith.constant 0 : index
    %c0_10 = arith.constant 0 : index
    %13 = vector.load %arg5[%c0_9, %c0_10] : memref<128x128xf32, #tpu.memory_space<vmem>>, vector<128x128xf32>
    %cst_11 = arith.constant dense<0.000000e+00> : vector<8x128xf32>
    %14 = tpu.matmul %12, %13, %cst_11 {dimension_numbers = #tpu.dot_dimension_numbers<[1], [0], [0], [1], [0, 0, 1, 1], [], []>, precision = #tpu.contract_precision<fp32>} : vector<8x128xf32>, vector<128x128xf32>, vector<8x128xf32> -> vector<8x128xf32>
    %c2 = arith.constant 2 : index
    %c0_12 = arith.constant 0 : index
    %15 = vector.load %arg2[%c2, %c0_12] : memref<3x128xf32, #tpu.memory_space<vmem>>, vector<1x128xf32>
    %16 = vector.broadcast %15 : vector<1x128xf32> to vector<8x128xf32>
    %17 = arith.addf %14, %16 : vector<8x128xf32>
    %18 = math.tanh %17 : vector<8x128xf32>
    %c0_13 = arith.constant 0 : index
    %c0_14 = arith.constant 0 : index
    %19 = vector.load %arg6[%c0_13, %c0_14] : memref<8x128xf32, #tpu.memory_space<vmem>>, vector<8x128xf32>
    tpu.vector_store %arg6[%c0_13, %c0_14], %18 {strides = array<i32>} : memref<8x128xf32, #tpu.memory_space<vmem>>, vector<8x128xf32>,
    return
  }
  func.func @transform_0(%arg0: i32) -> (i32, i32) {
    %c0_i32 = arith.constant 0 : i32
    %c0_i32_0 = arith.constant 0 : i32
    return %arg0, %c0_i32 : i32, i32
  }
  func.func @transform_1(%arg0: i32) -> (i32, i32) {
    %c0_i32 = arith.constant 0 : i32
    %c0_i32_0 = arith.constant 0 : i32
    %c0_i32_1 = arith.constant 0 : i32
    return %c0_i32, %c0_i32_0 : i32, i32
  }
  func.func @transform_2(%arg0: i32) -> (i32, i32) {
    %c0_i32 = arith.constant 0 : i32
    %c0_i32_0 = arith.constant 0 : i32
    %c0_i32_1 = arith.constant 0 : i32
    return %c0_i32, %c0_i32_0 : i32, i32
  }
  func.func @transform_3(%arg0: i32) -> (i32, i32) {
    %c0_i32 = arith.constant 0 : i32
    %c0_i32_0 = arith.constant 0 : i32
    %c0_i32_1 = arith.constant 0 : i32
    return %c0_i32, %c0_i32_0 : i32, i32
  }
  func.func @transform_4(%arg0: i32) -> (i32, i32) {
    %c0_i32 = arith.constant 0 : i32
    %c0_i32_0 = arith.constant 0 : i32
    %c0_i32_1 = arith.constant 0 : i32
    return %c0_i32, %c0_i32_0 : i32, i32
  }
  func.func @transform_5(%arg0: i32) -> (i32, i32) {
    %c0_i32 = arith.constant 0 : i32
    %c0_i32_0 = arith.constant 0 : i32
    return %arg0, %c0_i32 : i32, i32
  }
}

module attributes {stable_mosaic.version = 11 : i64} {
  func.func @kernel(%arg0: i32, %arg1: memref<8x128xf32, #tpu.memory_space<vmem>>, %arg2: memref<3x128xf32, #tpu.memory_space<vmem>>, %arg3: memref<128x128xf32, #tpu.memory_space<vmem>>, %arg4: memref<128x128xf32, #tpu.memory_space<vmem>>, %arg5: memref<128x128xf32, #tpu.memory_space<vmem>>, %arg6: memref<8x128xf32, #tpu.memory_space<vmem>>) attributes {dimension_semantics = [#tpu.dimension_semantics<parallel>], iteration_bounds = array<i64: 1>, scalar_prefetch = 0 : i64, scratch_operands = 0 : i64, tpu.core_type = #tpu.core_type<tc>, window_params = [{transform_indices = @transform_0, window_bounds = array<i64: 8, 128>}, {pipeline_mode = #tpu.pipeline_mode<synchronous>, transform_indices = @transform_1, window_bounds = array<i64: 3, 128>}, {pipeline_mode = #tpu.pipeline_mode<synchronous>, transform_indices = @transform_2, window_bounds = array<i64: 128, 128>}, {pipeline_mode = #tpu.pipeline_mode<synchronous>, transform_indices = @transform_3, window_bounds = array<i64: 128, 128>}, {pipeline_mode = #tpu.pipeline_mode<synchronous>, transform_indices = @transform_4, window_bounds = array<i64: 128, 128>}, {transform_indices = @transform_5, window_bounds = array<i64: 8, 128>}]} {
    %c0 = arith.constant 0 : index
    %c0_0 = arith.constant 0 : index
    %0 = vector.load %arg1[%c0, %c0_0] : memref<8x128xf32, #tpu.memory_space<vmem>>, vector<8x128xf32>
    %c0_1 = arith.constant 0 : index
    %c0_2 = arith.constant 0 : index
    %1 = vector.load %arg3[%c0_1, %c0_2] : memref<128x128xf32, #tpu.memory_space<vmem>>, vector<128x128xf32>
    %cst = arith.constant dense<0.000000e+00> : vector<8x128xf32>
    %2 = tpu.matmul %0, %1, %cst {dimension_numbers = #tpu.dot_dimension_numbers<[1], [0], [0], [1], [0, 0, 1, 1], [], []>, precision = #tpu.contract_precision<fp32>} : vector<8x128xf32>, vector<128x128xf32>, vector<8x128xf32> -> vector<8x128xf32>
    %c0_3 = arith.constant 0 : index
    %c0_4 = arith.constant 0 : index
    %3 = vector.load %arg2[%c0_3, %c0_4] : memref<3x128xf32, #tpu.memory_space<vmem>>, vector<1x128xf32>
    %4 = vector.broadcast %3 : vector<1x128xf32> to vector<8x128xf32>
    %5 = arith.addf %2, %4 : vector<8x128xf32>
    %6 = math.tanh %5 : vector<8x128xf32>
    %c0_5 = arith.constant 0 : index
    %c0_6 = arith.constant 0 : index
    %7 = vector.load %arg4[%c0_5, %c0_6] : memref<128x128xf32, #tpu.memory_space<vmem>>, vector<128x128xf32>
    %cst_7 = arith.constant dense<0.000000e+00> : vector<8x128xf32>
    %8 = tpu.matmul %6, %7, %cst_7 {dimension_numbers = #tpu.dot_dimension_numbers<[1], [0], [0], [1], [0, 0, 1, 1], [], []>, precision = #tpu.contract_precision<fp32>} : vector<8x128xf32>, vector<128x128xf32>, vector<8x128xf32> -> vector<8x128xf32>
    %c1 = arith.constant 1 : index
    %c0_8 = arith.constant 0 : index
    %9 = vector.load %arg2[%c1, %c0_8] : memref<3x128xf32, #tpu.memory_space<vmem>>, vector<1x128xf32>
    %10 = vector.broadcast %9 : vector<1x128xf32> to vector<8x128xf32>
    %11 = arith.addf %8, %10 : vector<8x128xf32>
    %12 = math.tanh %11 : vector<8x128xf32>
    %c0_9 = arith.constant 0 : index
    %c0_10 = arith.constant 0 : index
    %13 = vector.load %arg5[%c0_9, %c0_10] : memref<128x128xf32, #tpu.memory_space<vmem>>, vector<128x128xf32>
    %cst_11 = arith.constant dense<0.000000e+00> : vector<8x128xf32>
    %14 = tpu.matmul %12, %13, %cst_11 {dimension_numbers = #tpu.dot_dimension_numbers<[1], [0], [0], [1], [0, 0, 1, 1], [], []>, precision = #tpu.contract_precision<fp32>} : vector<8x128xf32>, vector<128x128xf32>, vector<8x128xf32> -> vector<8x128xf32>
    %c2 = arith.constant 2 : index
    %c0_12 = arith.constant 0 : index
    %15 = vector.load %arg2[%c2, %c0_12] : memref<3x128xf32, #tpu.memory_space<vmem>>, vector<1x128xf32>
    %16 = vector.broadcast %15 : vector<1x128xf32> to vector<8x128xf32>
    %17 = arith.addf %14, %16 : vector<8x128xf32>
    %18 = math.tanh %17 : vector<8x128xf32>
    %c0_13 = arith.constant 0 : index
    %c0_14 = arith.constant 0 : index
    %19 = vector.load %arg6[%c0_13, %c0_14] : memref<8x128xf32, #tpu.memory_space<vmem>>, vector<8x128xf32>
    tpu.vector_store %arg6[%c0_13, %c0_14], %18 {strides = array<i32>} : memref<8x128xf32, #tpu.memory_space<vmem>>, vector<8x128xf32>,
    return
  }
  func.func @transform_0(%arg0: i32) -> (i32, i32) {
    %c0_i32 = arith.constant 0 : i32
    %c0_i32_0 = arith.constant 0 : i32
    return %arg0, %c0_i32 : i32, i32
  }
  func.func @transform_1(%arg0: i32) -> (i32, i32) {
    %c0_i32 = arith.constant 0 : i32
    %c0_i32_0 = arith.constant 0 : i32
    %c0_i32_1 = arith.constant 0 : i32
    return %c0_i32, %c0_i32_0 : i32, i32
  }
  func.func @transform_2(%arg0: i32) -> (i32, i32) {
    %c0_i32 = arith.constant 0 : i32
    %c0_i32_0 = arith.constant 0 : i32
    %c0_i32_1 = arith.constant 0 : i32
    return %c0_i32, %c0_i32_0 : i32, i32
  }
  func.func @transform_3(%arg0: i32) -> (i32, i32) {
    %c0_i32 = arith.constant 0 : i32
    %c0_i32_0 = arith.constant 0 : i32
    %c0_i32_1 = arith.constant 0 : i32
    return %c0_i32, %c0_i32_0 : i32, i32
  }
  func.func @transform_4(%arg0: i32) -> (i32, i32) {
    %c0_i32 = arith.constant 0 : i32
    %c0_i32_0 = arith.constant 0 : i32
    %c0_i32_1 = arith.constant 0 : i32
    return %c0_i32, %c0_i32_0 : i32, i32
  }
  func.func @transform_5(%arg0: i32) -> (i32, i32) {
    %c0_i32 = arith.constant 0 : i32
    %c0_i32_0 = arith.constant 0 : i32
    return %arg0, %c0_i32 : i32, i32
  }
}

</mosaic_0001>

<bundles_post_ra>
// kernel: fwd.1
= control target key start
LH: loop header
LB: loop body
LE: loop exit
PB: predicated region body
PF: predicated region fallthrough
CT: control target
= control target key end

     0   :  { %10 = vsyncpa [#allocation3], 0  ;;  %s2024_s0 = inlined_call_operand.vmem [shape: f32[8,128], index: 0, kind: input, shape index: {}]   ;;  %s2025_s1 = inlined_call_operand.vmem [shape: f32[3,128], index: 1, kind: input, shape index: {}]   ;;  %s2026_s2 = inlined_call_operand.hbm [shape: f32[128,128], index: 2, kind: input, shape index: {}]   ;;  %s2027_s3 = inlined_call_operand.hbm [shape: f32[128,128], index: 3, kind: input, shape index: {}]   ;;  %s2028_s4 = inlined_call_operand.hbm [shape: f32[128,128], index: 4, kind: input, shape index: {}]   ;;  %s2029_s5 = inlined_call_operand.hbm [shape: f32[8,128], index: 5, kind: output, shape index: {}]  }
   0x1   :  { %11 = vsyncpa [#allocation6], 0 }
   0x2   :  { %12 = vsyncpa [#allocation4], 0  ;;  %s34_s20 = sshll.u32 %s2027_s3, 4  ;;  %s1285_s21 = smov [#allocation5]   ;;  %s35_s20 = int_to_ptr.hbm [resolvable:$true] %s34_s20 }
   0x3   :  { %s36_s22 = sshll.u32 %s1285_s21, 4  ;;  %s21_s25 = sshll.u32 %s2026_s2, 4  ;;  %s37_s22 = int_to_ptr.vmem [resolvable:$true] %s36_s22  ;;  %s22_s25 = int_to_ptr.hbm [resolvable:$true] %s21_s25 }
   0x4   :  { %s1286_s26 = smov 128   ;;  %s1287_s27 = smov 8  }
   0x5   :  { %42 = dma.hbm_to_vmem [thread:$0]  %s35_s20, 2048, %s37_s22, [#allocation6], %s1286_s26, %s1286_s26, %s1287_s27  }
   0x6   :  { %s1288_s28 = smov [#allocation2]   ;;  %s47_s7 = sshll.u32 %s2028_s4, 4  ;;  %s48_s7 = int_to_ptr.hbm [resolvable:$true] %s47_s7 }
   0x7   :  { %s23_s29 = sshll.u32 %s1288_s28, 4  ;;  %s1289_s3 = smov [#allocation7]   ;;  %s24_s29 = int_to_ptr.vmem [resolvable:$true] %s23_s29 }
   0x8   :  { %29 = dma.hbm_to_vmem [thread:$0]  %s22_s25, 2048, %s24_s29, [#allocation3], %s1286_s26, %s1286_s26, %s1287_s27  }
   0x9   :  { %s49_s8 = sshll.u32 %s1289_s3, 4  ;;  %s50_s8 = int_to_ptr.vmem [resolvable:$true] %s49_s8 }
   0xa   :  { %55 = dma.hbm_to_vmem [thread:$0]  %s48_s7, 2048, %s50_s8, [#allocation6], %s1286_s26, %s1286_s26, %s1287_s27  }
   0xb   :  { %1279 = dma.done.wait [#allocation3], 2048  }
   0xc   :  { %1280 = vsyncadd [#allocation3], 4294965248 }
   0xd   :  { %1281 = dma.done.wait [#allocation6], 4096  }
   0xe   :  { %1282 = vsyncadd [#allocation6], 4294963200  ;;  %v84_v0 = vld [vmem:[#allocation2 + $0x78] sm:$0xff]  ;;  %v83_v1 = vld [vmem:[#allocation2 + $0x70] sm:$0xff]  ;;  %s1290_s14 = smov [#allocation8]   ;;  %s1157_s18 = sshll.u32 %s2029_s5, 4  ;;  %s1158_s18 = int_to_ptr.hbm [resolvable:$true] %s1157_s18 }
   0xf   :  { %v82_v2 = vld [vmem:[#allocation2 + $0x68] sm:$0xff]  ;;  %v1330_v3 = vand.u32 4294901760, %v84_v0  ;;  %v1332_v4 = vand.u32 4294901760, %v83_v1  ;;  %v81_v6 = vld [vmem:[#allocation2 + $0x60] sm:$0xff]  ;;  %v80_v7 = vld [vmem:[#allocation2 + $0x58] sm:$0xff]  ;;  %s1155_s15 = sshll.u32 %s1290_s14, 4  ;;  %s1156_s15 = int_to_ptr.vmem [resolvable:$true] %s1155_s15 }
  0x10   :  { %v1334_v5 = vand.u32 4294901760, %v82_v2  ;;  %v79_v8 = vld [vmem:[#allocation2 + $0x50] sm:$0xff]  ;;  %v1336_v9 = vand.u32 4294901760, %v81_v6  ;;  %v1338_v10 = vand.u32 4294901760, %v80_v7  ;;  %v78_v12 = vld [vmem:[#allocation2 + $0x48] sm:$0xff]  ;;  %v77_v13 = vld [vmem:[#allocation2 + $0x40] sm:$0xff] }
  0x11   :  { %v1340_v11 = vand.u32 4294901760, %v79_v8  ;;  %88 = vmatpush.msra.mxu0 %v1330_v3  ;;  %v1344_v14 = vsub.f32 %v84_v0, %v1330_v3  ;;  %v1347_v15 = vsub.f32 %v83_v1, %v1332_v4  ;;  %v1352_v17 = vand.u32 4294901760, %v78_v12  ;;  %284 = vmatpush.msra.mxu3 %v1330_v3  ;;  %v76_v21 = vld [vmem:[#allocation2 + $0x38] sm:$0xff]  ;;  %v75_v34 = vld [vmem:[#allocation2 + $0x30] sm:$0xff]  ;;  %v74_v35 = vld [vmem:[#allocation2 + $0x28] sm:$0xff] }
  0x12   :  { %v1350_v16 = vsub.f32 %v82_v2, %v1334_v5  ;;  %v1356_v18 = vsub.f32 %v81_v6, %v1336_v9  ;;  %v1359_v19 = vsub.f32 %v80_v7, %v1338_v10  ;;  %v1361_v20 = vand.u32 4294901760, %v77_v13  ;;  %v73_v42 = vld [vmem:[#allocation2 + $0x20] sm:$0xff]  ;;  %v72_v47 = vld [vmem:[#allocation2 + $0x18] sm:$0xff]  ;;  %v71_v53 = vld [vmem:[#allocation2 + $0x10] sm:$0xff] }
  0x13   :  { %90 = vmatpush.msra.mxu0 %v1332_v4  ;;  %v130_v22 = vand.u32 4294901760, %v1344_v14  ;;  %v136_v23 = vand.u32 4294901760, %v1347_v15  ;;  %v1368_v25 = vsub.f32 %v79_v8, %v1340_v11  ;;  %231 = vmatpush.msra.mxu2 %v1344_v14  ;;  %v1374_v28 = vsub.f32 %v78_v12, %v1352_v17  ;;  %v70_v61 = vld [vmem:[#allocation2 + $0x8] sm:$0xff]  ;;  %v69_v2 = vld [vmem:[#allocation2] sm:$0xff] }
  0x14   :  { %v142_v24 = vand.u32 4294901760, %v1350_v16  ;;  %v148_v26 = vand.u32 4294901760, %v1356_v18  ;;  %v154_v27 = vand.u32 4294901760, %v1359_v19  ;;  %286 = vmatpush.msra.mxu3 %v1332_v4  ;;  %v1387_v32 = vand.u32 4294901760, %v76_v21 }
  0x15   :  { %v131_v29 = vsub.f32 %v1344_v14, %v130_v22  ;;  %92 = vmatpush.msra.mxu0 %v1334_v5  ;;  %v137_v30 = vsub.f32 %v1347_v15, %v136_v23  ;;  %234 = vmatpush.msra.mxu2 %v1347_v15  ;;  %v1391_v33 = vsub.f32 %v77_v13, %v1361_v20  ;;  %v160_v39 = vand.u32 4294901760, %v1368_v25  ;;  %v444_v14 = vld [vmem:[#allocation5 + $0x78] sm:$0xff] }
  0x16   :  { %v143_v31 = vsub.f32 %v1350_v16, %v142_v24  ;;  %288 = vmatpush.msra.mxu3 %v1334_v5  ;;  %v149_v38 = vsub.f32 %v1356_v18, %v148_v26  ;;  %v155_v40 = vsub.f32 %v1359_v19, %v154_v27  ;;  %v166_v41 = vand.u32 4294901760, %v1374_v28 }
  0x17   :  { %v132_v36 = vand.u32 4294901760, %v131_v29  ;;  %v138_v37 = vand.u32 4294901760, %v137_v30  ;;  %94 = vmatpush.msra.mxu0 %v1336_v9  ;;  %237 = vmatpush.msra.mxu2 %v1350_v16  ;;  %v1406_v44 = vand.u32 4294901760, %v75_v34  ;;  %v1409_v45 = vsub.f32 %v76_v21, %v1387_v32  ;;  %v68_v29 = vld [vmem:[%s2024_s0] sm:$0xff] }
  0x18   :  { %290 = vmatpush.msra.mxu3 %v1336_v9  ;;  %v144_v43 = vand.u32 4294901760, %v143_v31  ;;  %v1411_v46 = vand.u32 4294901760, %v74_v35  ;;  %v172_v48 = vand.u32 4294901760, %v1391_v33  ;;  %v150_v49 = vand.u32 4294901760, %v149_v38 }
  0x19   :  { %133 = vmatpush.msra.mxu1 %v132_v36  ;;  %96 = vmatpush.msra.mxu0 %v1338_v10  ;;  %v161_v50 = vsub.f32 %v1368_v25, %v160_v39  ;;  %v1421_v51 = vsub.f32 %v75_v34, %v1406_v44  ;;  %v1423_v52 = vand.u32 4294901760, %v73_v42  ;;  %v1425_v54 = vand.u32 4294901760, %v72_v47 }
  0x1a   :  { %240 = vmatpush.msra.mxu2 %v1356_v18  ;;  %292 = vmatpush.msra.mxu3 %v1338_v10  ;;  %v156_v55 = vand.u32 4294901760, %v155_v40  ;;  %v167_v56 = vsub.f32 %v1374_v28, %v166_v41  ;;  %v178_v57 = vand.u32 4294901760, %v1409_v45  ;;  %v1435_v58 = vsub.f32 %v74_v35, %v1411_v46 }
  0x1b   :  { %139 = vmatpush.msra.mxu1 %v138_v37  ;;  %98 = vmatpush.msra.mxu0 %v1340_v11  ;;  %v173_v59 = vsub.f32 %v1391_v33, %v172_v48  ;;  %v1440_v60 = vand.u32 4294901760, %v71_v53  ;;  %v162_v62 = vand.u32 4294901760, %v161_v50  ;;  %v184_v63 = vand.u32 4294901760, %v1421_v51 }
  0x1c   :  { %243 = vmatpush.msra.mxu2 %v1359_v19  ;;  %294 = vmatpush.msra.mxu3 %v1340_v11  ;;  %v1447_v0 = vsub.f32 %v73_v42, %v1423_v52  ;;  %v1450_v1 = vsub.f32 %v72_v47, %v1425_v54  ;;  %v168_v6 = vand.u32 4294901760, %v167_v56  ;;  %v179_v7 = vsub.f32 %v1409_v45, %v178_v57  ;;  %v437_v19 = vld [vmem:[#allocation5 + $0x40] sm:$0xff] }
  0x1d   :  { %145 = vmatpush.msra.mxu1 %v144_v43  ;;  %100 = vmatpush.msra.mxu0 %v1352_v17  ;;  %v190_v8 = vand.u32 4294901760, %v1435_v58  ;;  %v1459_v12 = vand.u32 4294901760, %v70_v61  ;;  %v174_v13 = vand.u32 4294901760, %v173_v59  ;;  %v1462_v21 = vsub.f32 %v71_v53, %v1440_v60 }
  0x1e   :  { %246 = vmatpush.msra.mxu2 %v1368_v25  ;;  %296 = vmatpush.msra.mxu3 %v1352_v17  ;;  %v185_v30 = vsub.f32 %v1421_v51, %v184_v63  ;;  %v196_v31 = vand.u32 4294901760, %v1447_v0  ;;  %v1474_v34 = vand.u32 4294901760, %v69_v2  ;;  %v1476_v35 = vand.u32 4294901760, %v68_v29 }
  0x1f   :  { %151 = vmatpush.msra.mxu1 %v150_v49  ;;  %102 = vmatpush.msra.mxu0 %v1361_v20  ;;  %v202_v36 = vand.u32 4294901760, %v1450_v1  ;;  %v180_v37 = vand.u32 4294901760, %v179_v7  ;;  %v191_v38 = vsub.f32 %v1435_v58, %v190_v8  ;;  %v1486_v40 = vsub.f32 %v70_v61, %v1459_v12 }
  0x20   :  { %249 = vmatpush.msra.mxu2 %v1374_v28  ;;  %298 = vmatpush.msra.mxu3 %v1361_v20  ;;  %v120_v42 = vsub.f32 %v68_v29, %v1476_v35  ;;  %v186_v43 = vand.u32 4294901760, %v185_v30  ;;  %v197_v47 = vsub.f32 %v1447_v0, %v196_v31  ;;  %v208_v49 = vand.u32 4294901760, %v1462_v21 }
  0x21   :  { %157 = vmatpush.msra.mxu1 %v156_v55  ;;  %104 = vmatpush.msra.mxu0 %v1387_v32  ;;  %v1497_v50 = vsub.f32 %v69_v2, %v1474_v34  ;;  %v192_v53 = vand.u32 4294901760, %v191_v38  ;;  %v203_v55 = vsub.f32 %v1450_v1, %v202_v36  ;;  %v214_v56 = vand.u32 4294901760, %v1486_v40 }
  0x22   :  { %252 = vmatpush.msra.mxu2 %v1391_v33  ;;  %300 = vmatpush.msra.mxu3 %v1387_v32  ;;  %v121_v59 = vand.u32 4294901760, %v120_v42  ;;  %v198_v61 = vand.u32 4294901760, %v197_v47  ;;  %v442_v47 = vld [vmem:[#allocation5 + $0x68] sm:$0xff]  ;;  %v1539_v15 = vand.u32 4294901760, %v444_v14  ;;  %v436_v33 = vld [vmem:[#allocation5 + $0x38] sm:$0xff] }
  0x23   :  { %163 = vmatpush.msra.mxu1 %v162_v62  ;;  %106 = vmatpush.msra.mxu0 %v1406_v44  ;;  %v209_v62 = vsub.f32 %v1462_v21, %v208_v49  ;;  %v220_v2 = vand.u32 4294901760, %v1497_v50  ;;  %v215_v7 = vsub.f32 %v1486_v40, %v214_v56  ;;  %v1543_v16 = vand.u32 4294901760, %v442_v47 }
  0x24   :  { %255 = vmatpush.msra.mxu2 %v1409_v45  ;;  %302 = vmatpush.msra.mxu3 %v1406_v44  ;;  %v1618_v45 = vand.u32 4294901760, %v436_v33 }
  0x25   :  { %169 = vmatpush.msra.mxu1 %v168_v6  ;;  %108 = vmatpush.msra.mxu0 %v1411_v46  ;;  %v204_v6 = vand.u32 4294901760, %v203_v55  ;;  %v210_v29 = vand.u32 4294901760, %v209_v62  ;;  %v221_v30 = vsub.f32 %v1497_v50, %v220_v2 }
  0x26   :  { %258 = vmatpush.msra.mxu2 %v1421_v51  ;;  %304 = vmatpush.msra.mxu3 %v1411_v46  ;;  %v1633_v51 = vsub.f32 %v436_v33, %v1618_v45 }
  0x27   :  { %175 = vmatpush.msra.mxu1 %v174_v13  ;;  %110 = vmatpush.msra.mxu0 %v1423_v52  ;;  %v122_v13 = vsub.f32 %v120_v42, %v121_v59 }
  0x28   :  { %261 = vmatpush.msra.mxu2 %v1435_v58  ;;  %306 = vmatpush.msra.mxu3 %v1423_v52 }
  0x29   :  { %181 = vmatpush.msra.mxu1 %v180_v37  ;;  %112 = vmatpush.msra.mxu0 %v1425_v54  ;;  %v216_v37 = vand.u32 4294901760, %v215_v7  ;;  %v123_v38 = vand.u32 4294901760, %v122_v13  ;;  %v1579_v13 = vand.u32 4294901760, %v437_v19 }
  0x2a   :  { %264 = vmatpush.msra.mxu2 %v1447_v0  ;;  %308 = vmatpush.msra.mxu3 %v1425_v54  ;;  %v430_v0 = vld [vmem:[#allocation5 + $0x8] sm:$0xff] }
  0x2b   :  { %187 = vmatpush.msra.mxu1 %v186_v43  ;;  %114 = vmatpush.msra.mxu0 %v1440_v60  ;;  %v222_v43 = vand.u32 4294901760, %v221_v30 }
  0x2c   :  { %267 = vmatpush.msra.mxu2 %v1450_v1  ;;  %310 = vmatpush.msra.mxu3 %v1440_v60  ;;  %v429_v1 = vld [vmem:[#allocation5] sm:$0xff] }
  0x2d   :  { %193 = vmatpush.msra.mxu1 %v192_v53  ;;  %116 = vmatpush.msra.mxu0 %v1459_v12  ;;  %v439_v53 = vld [vmem:[#allocation5 + $0x50] sm:$0xff] }
  0x2e   :  { %270 = vmatpush.msra.mxu2 %v1462_v21  ;;  %312 = vmatpush.msra.mxu3 %v1459_v12  ;;  %v1550_v55 = vand.u32 4294901760, %v439_v53 }
  0x2f   :  { %199 = vmatpush.msra.mxu1 %v198_v61  ;;  %118 = vmatpush.msra.mxu0 %v1474_v34  ;;  %v1562_v61 = vsub.f32 %v442_v47, %v1543_v16 }
  0x30   :  { %273 = vmatpush.msra.mxu2 %v1486_v40  ;;  %314 = vmatpush.msra.mxu3 %v1474_v34  ;;  %v1584_v30 = vsub.f32 %v439_v53, %v1550_v55 }
  0x31   :  { %325 = vmatpush.msrb.mxu0 %v130_v22  ;;  %205 = vmatpush.msra.mxu1 %v204_v6  ;;  %v443_v22 = vld [vmem:[#allocation5 + $0x70] sm:$0xff]  ;;  %v502_v7 = vand.u32 4294901760, %v1562_v61 }
  0x32   :  { %276 = vmatpush.msra.mxu2 %v1497_v50  ;;  %318 = vmatmul.f32.vlgmr.msra.gmra.mxu3 %v121_v59 }
  0x33   :  { %329 = vmatpush.msrb.mxu0 %v136_v23  ;;  %211 = vmatpush.msra.mxu1 %v210_v29  ;;  %v1541_v23 = vand.u32 4294901760, %v443_v22 }
  0x34   :  { %279 = vmatmul.f32.vlgmr.msra.gmra.mxu2 %v120_v42  ;;  %124 = vmatmul.f32.vlgmr.msra.gmra.mxu0 %v123_v38  ;;  %v440_v42 = vld [vmem:[#allocation5 + $0x58] sm:$0xff] }
  0x35   :  { %333 = vmatpush.msrb.mxu0 %v142_v24  ;;  %217 = vmatpush.msra.mxu1 %v216_v37  ;;  %v441_v24 = vld [vmem:[#allocation5 + $0x60] sm:$0xff]  ;;  %v1559_v59 = vsub.f32 %v443_v22, %v1541_v23  ;;  %v503_v37 = vsub.f32 %v1562_v61, %v502_v7 }
  0x36   :  { %v1546_v18 = vand.u32 4294901760, %v441_v24  ;;  %448 = vmatpush.msrb.mxu2 %v1539_v15 }
  0x37   :  { %337 = vmatpush.msrb.mxu0 %v148_v26  ;;  %223 = vmatpush.msra.mxu1 %v222_v43  ;;  %v1548_v26 = vand.u32 4294901760, %v440_v42  ;;  %v1607_v43 = vsub.f32 %v437_v19, %v1579_v13  ;;  %v504_v53 = vand.u32 4294901760, %v503_v37 }
  0x38   :  { %225 = vmatmul.f32.vlgmr.msra.gmra.mxu1 %v1476_v35  ;;  %v1567_v6 = vsub.f32 %v441_v24, %v1546_v18  ;;  %450 = vmatpush.msrb.mxu2 %v1541_v23  ;;  %v520_v24 = vand.u32 4294901760, %v1584_v30 }
  0x39   :  { %392 = vmatpush.msrb.mxu1 %v1330_v3  ;;  %341 = vmatpush.msrb.mxu0 %v154_v27  ;;  %v438_v3 = vld [vmem:[#allocation5 + $0x48] sm:$0xff]  ;;  %v1556_v27 = vsub.f32 %v444_v14, %v1539_v15 }
  0x3a   :  { %v1564_v62 = vand.u32 4294901760, %v438_v3  ;;  %v508_v29 = vand.u32 4294901760, %v1567_v6  ;;  %452 = vmatpush.msrb.mxu2 %v1543_v16  ;;  %v434_v14 = vld [vmem:[#allocation5 + $0x28] sm:$0xff] }
  0x3b   :  { %394 = vmatpush.msrb.mxu1 %v1332_v4  ;;  %345 = vmatpush.msrb.mxu0 %v160_v39  ;;  %v1571_v4 = vsub.f32 %v440_v42, %v1548_v26  ;;  %v490_v25 = vand.u32 4294901760, %v1556_v27  ;;  %v496_v39 = vand.u32 4294901760, %v1559_v59  ;;  %v433_v42 = vld [vmem:[#allocation5 + $0x20] sm:$0xff]  ;;  %v1626_v19 = vand.u32 4294901760, %v434_v14 }
  0x3c   :  { %v509_v47 = vsub.f32 %v1567_v6, %v508_v29  ;;  %454 = vmatpush.msrb.mxu2 %v1546_v18 }
  0x3d   :  { %396 = vmatpush.msrb.mxu1 %v1334_v5  ;;  %349 = vmatpush.msrb.mxu0 %v166_v41  ;;  %v491_v5 = vsub.f32 %v1556_v27, %v490_v25  ;;  %v497_v28 = vsub.f32 %v1559_v59, %v496_v39  ;;  %v1596_v41 = vsub.f32 %v438_v3, %v1564_v62 }
  0x3e   :  { %456 = vmatpush.msrb.mxu2 %v1548_v26 }
  0x3f   :  { %398 = vmatpush.msrb.mxu1 %v1336_v9  ;;  %353 = vmatpush.msrb.mxu0 %v172_v48  ;;  %v514_v9 = vand.u32 4294901760, %v1571_v4  ;;  %v435_v48 = vld [vmem:[#allocation5 + $0x30] sm:$0xff]  ;;  %v492_v38 = vand.u32 4294901760, %v491_v5  ;;  %v498_v22 = vand.u32 4294901760, %v497_v28  ;;  %v510_v5 = vand.u32 4294901760, %v509_v47 }
  0x40   :  { %v521_v28 = vsub.f32 %v1584_v30, %v520_v24  ;;  %458 = vmatpush.msrb.mxu2 %v1550_v55 }
  0x41   :  { %400 = vmatpush.msrb.mxu1 %v1338_v10  ;;  %357 = vmatpush.msrb.mxu0 %v178_v57  ;;  %v526_v10 = vand.u32 4294901760, %v1596_v41  ;;  %v1620_v57 = vand.u32 4294901760, %v435_v48  ;;  %v515_v3 = vsub.f32 %v1571_v4, %v514_v9 }
  0x42   :  { %493 = vmatpush.msrb.mxu3 %v492_v38  ;;  %v538_v38 = vand.u32 4294901760, %v1633_v51  ;;  %460 = vmatpush.msrb.mxu2 %v1564_v62 }
  0x43   :  { %402 = vmatpush.msrb.mxu1 %v1340_v11  ;;  %361 = vmatpush.msrb.mxu0 %v184_v63  ;;  %v532_v11 = vand.u32 4294901760, %v1607_v43  ;;  %v432_v63 = vld [vmem:[#allocation5 + $0x18] sm:$0xff]  ;;  %v1640_v37 = vsub.f32 %v435_v48, %v1620_v57  ;;  %v527_v58 = vsub.f32 %v1596_v41, %v526_v10  ;;  %v516_v33 = vand.u32 4294901760, %v515_v3 }
  0x44   :  { %499 = vmatpush.msrb.mxu3 %v498_v22  ;;  %v1653_v48 = vsub.f32 %v434_v14, %v1626_v19  ;;  %v1655_v22 = vand.u32 4294901760, %v432_v63  ;;  %462 = vmatpush.msrb.mxu2 %v1579_v13 }
  0x45   :  { %404 = vmatpush.msrb.mxu1 %v1352_v17  ;;  %365 = vmatpush.msrb.mxu0 %v190_v8  ;;  %v1642_v17 = vand.u32 4294901760, %v433_v42  ;;  %v431_v8 = vld [vmem:[#allocation5 + $0x10] sm:$0xff]  ;;  %v544_v47 = vand.u32 4294901760, %v1640_v37 }
  0x46   :  { %505 = vmatpush.msrb.mxu3 %v504_v53  ;;  %v1668_v53 = vand.u32 4294901760, %v431_v8  ;;  %v550_v3 = vand.u32 4294901760, %v1653_v48  ;;  %464 = vmatpush.msrb.mxu2 %v1618_v45 }
  0x47   :  { %406 = vmatpush.msrb.mxu1 %v1361_v20  ;;  %369 = vmatpush.msrb.mxu0 %v196_v31  ;;  %v533_v20 = vsub.f32 %v1607_v43, %v532_v11  ;;  %v522_v31 = vand.u32 4294901760, %v521_v28  ;;  %v1666_v14 = vsub.f32 %v433_v42, %v1642_v17  ;;  %v1679_v42 = vsub.f32 %v432_v63, %v1655_v22 }
  0x48   :  { %511 = vmatpush.msrb.mxu3 %v510_v5  ;;  %v1681_v5 = vand.u32 4294901760, %v430_v0  ;;  %v545_v21 = vsub.f32 %v1640_v37, %v544_v47  ;;  %466 = vmatpush.msrb.mxu2 %v1620_v57  ;;  %v1692_v63 = vsub.f32 %v431_v8, %v1668_v53  ;;  %v1694_v28 = vand.u32 4294901760, %v429_v1 }
  0x49   :  { %408 = vmatpush.msrb.mxu1 %v1387_v32  ;;  %373 = vmatpush.msrb.mxu0 %v202_v36  ;;  %v528_v32 = vand.u32 4294901760, %v527_v58  ;;  %v539_v36 = vsub.f32 %v1633_v51, %v538_v38  ;;  %v551_v40 = vsub.f32 %v1653_v48, %v550_v3 }
  0x4a   :  { %517 = vmatpush.msrb.mxu3 %v516_v33  ;;  %v1705_v58 = vsub.f32 %v430_v0, %v1681_v5  ;;  %468 = vmatpush.msrb.mxu2 %v1626_v19  ;;  %v1715_v8 = vsub.f32 %v429_v1, %v1694_v28 }
  0x4b   :  { %410 = vmatpush.msrb.mxu1 %v1406_v44  ;;  %377 = vmatpush.msrb.mxu0 %v208_v49  ;;  %v534_v44 = vand.u32 4294901760, %v533_v20  ;;  %v556_v49 = vand.u32 4294901760, %v1666_v14 }
  0x4c   :  { %523 = vmatpush.msrb.mxu3 %v522_v31  ;;  %v574_v20 = vand.u32 4294901760, %v1705_v58  ;;  %470 = vmatpush.msrb.mxu2 %v1642_v17  ;;  %v580_v31 = vand.u32 4294901760, %v1715_v8 }
  0x4d   :  { %412 = vmatpush.msrb.mxu1 %v1411_v46  ;;  %381 = vmatpush.msrb.mxu0 %v214_v56  ;;  %v540_v46 = vand.u32 4294901760, %v539_v36  ;;  %v562_v56 = vand.u32 4294901760, %v1679_v42  ;;  %v557_v50 = vsub.f32 %v1666_v14, %v556_v49 }
  0x4e   :  { %529 = vmatpush.msrb.mxu3 %v528_v32  ;;  %472 = vmatpush.msrb.mxu2 %v1655_v22  ;;  %v575_v32 = vsub.f32 %v1705_v58, %v574_v20 }
  0x4f   :  { %414 = vmatpush.msrb.mxu1 %v1423_v52  ;;  %385 = vmatpush.msrb.mxu0 %v220_v2  ;;  %v546_v52 = vand.u32 4294901760, %v545_v21  ;;  %v568_v2 = vand.u32 4294901760, %v1692_v63  ;;  %v563_v33 = vsub.f32 %v1679_v42, %v562_v56  ;;  %v558_v0 = vand.u32 4294901760, %v557_v50 }
  0x50   :  { %387 = vmatmul.f32.vlgmr.msrb.gmra.mxu0 %v1476_v35  ;;  %535 = vmatpush.msrb.mxu3 %v534_v44 }
  0x51   :  { %416 = vmatpush.msrb.mxu1 %v1425_v54  ;;  %591 = vmatpush.msra.mxu0 %v1556_v27  ;;  %v552_v54 = vand.u32 4294901760, %v551_v40  ;;  %v796_v40 = vld [vmem:[#allocation7 + $0x38] sm:$0xff] }
  0x52   :  { %541 = vmatpush.msrb.mxu3 %v540_v46  ;;  %474 = vmatpush.msrb.mxu2 %v1668_v53 }
  0x53   :  { %418 = vmatpush.msrb.mxu1 %v1440_v60  ;;  %594 = vmatpush.msra.mxu0 %v1559_v59  ;;  %v569_v60 = vsub.f32 %v1692_v63, %v568_v2 }
  0x54   :  { %547 = vmatpush.msrb.mxu3 %v546_v52  ;;  %476 = vmatpush.msrb.mxu2 %v1681_v5 }
  0x55   :  { %420 = vmatpush.msrb.mxu1 %v1459_v12  ;;  %597 = vmatpush.msra.mxu0 %v1562_v61  ;;  %v564_v12 = vand.u32 4294901760, %v563_v33  ;;  %v570_v1 = vand.u32 4294901760, %v569_v60 }
  0x56   :  { %553 = vmatpush.msrb.mxu3 %v552_v54  ;;  %478 = vmatpush.msrb.mxu2 %v1694_v28 }
  0x57   :  { %422 = vmatpush.msrb.mxu1 %v1474_v34  ;;  %600 = vmatpush.msra.mxu0 %v1567_v6  ;;  %v581_v34 = vsub.f32 %v1715_v8, %v580_v31  ;;  %v804_v6 = vld [vmem:[#allocation7 + $0x78] sm:$0xff] }
  0x58   :  { %424 = vmatmul.f32.vlgmr.msrb.gmra.mxu1 %v1476_v35  ;;  %559 = vmatpush.msrb.mxu3 %v558_v0  ;;  %v576_v35 = vand.u32 4294901760, %v575_v32 }
  0x59   :  { %644 = vmatpush.msra.mxu1 %v1539_v15  ;;  %603 = vmatpush.msra.mxu0 %v1571_v4  ;;  %v582_v36 = vand.u32 4294901760, %v581_v34  ;;  %v803_v4 = vld [vmem:[#allocation7 + $0x70] sm:$0xff] }
  0x5a   :  { %565 = vmatpush.msrb.mxu3 %v564_v12  ;;  %685 = vmatpush.msra.mxu2 %v490_v25  ;;  %v802_v25 = vld [vmem:[#allocation7 + $0x68] sm:$0xff] }
  0x5b   :  { %646 = vmatpush.msra.mxu1 %v1541_v23  ;;  %606 = vmatpush.msra.mxu0 %v1584_v30  ;;  %v801_v30 = vld [vmem:[#allocation7 + $0x60] sm:$0xff] }
  0x5c   :  { %571 = vmatpush.msrb.mxu3 %v570_v1  ;;  %689 = vmatpush.msra.mxu2 %v496_v39 }
  0x5d   :  { %648 = vmatpush.msra.mxu1 %v1543_v16  ;;  %609 = vmatpush.msra.mxu0 %v1596_v41  ;;  %v800_v41 = vld [vmem:[#allocation7 + $0x58] sm:$0xff] }
  0x5e   :  { %577 = vmatpush.msrb.mxu3 %v576_v35  ;;  %693 = vmatpush.msra.mxu2 %v502_v7  ;;  %v1822_v7 = vand.u32 4294901760, %v804_v6 }
  0x5f   :  { %650 = vmatpush.msra.mxu1 %v1546_v18  ;;  %612 = vmatpush.msra.mxu0 %v1607_v43  ;;  %v1828_v43 = vand.u32 4294901760, %v801_v30 }
  0x60   :  { %583 = vmatpush.msrb.mxu3 %v582_v36  ;;  %697 = vmatpush.msra.mxu2 %v508_v29  ;;  %v1826_v29 = vand.u32 4294901760, %v802_v25 }
  0x61   :  { %652 = vmatpush.msra.mxu1 %v1548_v26  ;;  %615 = vmatpush.msra.mxu0 %v1633_v51 }
  0x62   :  { %752 = vmatpush.msra.mxu3 %v1539_v15  ;;  %701 = vmatpush.msra.mxu2 %v514_v9  ;;  %v1174_v15 = vld [vmem:[%s2025_s1] ss:$0 sm:$0xff]  ;;  %v799_v9 = vld [vmem:[#allocation7 + $0x50] sm:$0xff]  ;;  %v1841_v51 = vsub.f32 %v802_v25, %v1826_v29 }
  0x63   :  { %654 = vmatpush.msra.mxu1 %v1550_v55  ;;  %618 = vmatpush.msra.mxu0 %v1640_v37 }
  0x64   :  { %754 = vmatpush.msra.mxu3 %v1541_v23  ;;  %705 = vmatpush.msra.mxu2 %v520_v24  ;;  %v1830_v24 = vand.u32 4294901760, %v800_v41 }
  0x65   :  { %656 = vmatpush.msra.mxu1 %v1564_v62  ;;  %621 = vmatpush.msra.mxu0 %v1653_v48 }
  0x66   :  { %756 = vmatpush.msra.mxu3 %v1543_v16  ;;  %709 = vmatpush.msra.mxu2 %v526_v10  ;;  %v1832_v10 = vand.u32 4294901760, %v799_v9  ;;  %v1850_v48 = vsub.f32 %v800_v41, %v1830_v24  ;;  %v794_v41 = vld [vmem:[#allocation7 + $0x28] sm:$0xff] }
  0x67   :  { %658 = vmatpush.msra.mxu1 %v1579_v13  ;;  %624 = vmatpush.msra.mxu0 %v1666_v14 }
  0x68   :  { %758 = vmatpush.msra.mxu3 %v1546_v18  ;;  %713 = vmatpush.msra.mxu2 %v532_v11  ;;  %v874_v44 = vand.u32 4294901760, %v1850_v48 }
  0x69   :  { %660 = vmatpush.msra.mxu1 %v1618_v45  ;;  %627 = vmatpush.msra.mxu0 %v1679_v42  ;;  %v862_v42 = vand.u32 4294901760, %v1841_v51 }
  0x6a   :  { %760 = vmatpush.msra.mxu3 %v1548_v26  ;;  %717 = vmatpush.msra.mxu2 %v538_v38  ;;  %v1847_v38 = vsub.f32 %v801_v30, %v1828_v43 }
  0x6b   :  { %662 = vmatpush.msra.mxu1 %v1620_v57  ;;  %630 = vmatpush.msra.mxu0 %v1692_v63 }
  0x6c   :  { %762 = vmatpush.msra.mxu3 %v1550_v55  ;;  %721 = vmatpush.msra.mxu2 %v544_v47 }
  0x6d   :  { %664 = vmatpush.msra.mxu1 %v1626_v19  ;;  %633 = vmatpush.msra.mxu0 %v1705_v58 }
  0x6e   :  { %764 = vmatpush.msra.mxu3 %v1564_v62  ;;  %725 = vmatpush.msra.mxu2 %v550_v3 }
  0x6f   :  { %666 = vmatpush.msra.mxu1 %v1642_v17  ;;  %636 = vmatpush.msra.mxu0 %v1715_v8  ;;  %v875_v8 = vsub.f32 %v1850_v48, %v874_v44 }
  0x70   :  { %766 = vmatpush.msra.mxu3 %v1579_v13  ;;  %729 = vmatpush.msra.mxu2 %v556_v49  ;;  %v1824_v13 = vand.u32 4294901760, %v803_v4 }
  0x71   :  { %668 = vmatpush.msra.mxu1 %v1655_v22  ;;  %808 = vmatpush.msrb.mxu0 %v1822_v7  ;;  %v876_v36 = vand.u32 4294901760, %v875_v8  ;;  %v790_v8 = vld [vmem:[#allocation7 + $0x8] sm:$0xff] }
  0x72   :  { %768 = vmatpush.msra.mxu3 %v1618_v45  ;;  %733 = vmatpush.msra.mxu2 %v562_v56  ;;  %v798_v45 = vld [vmem:[#allocation7 + $0x48] sm:$0xff]  ;;  %v1838_v11 = vsub.f32 %v803_v4, %v1824_v13  ;;  %v795_v56 = vld [vmem:[#allocation7 + $0x30] sm:$0xff] }
  0x73   :  { %670 = vmatpush.msra.mxu1 %v1668_v53  ;;  %v1844_v37 = vand.u32 4294901760, %v798_v45  ;;  %810 = vmatpush.msrb.mxu0 %v1824_v13  ;;  %v1891_v0 = vand.u32 4294901760, %v795_v56 }
  0x74   :  { %770 = vmatpush.msra.mxu3 %v1620_v57  ;;  %737 = vmatpush.msra.mxu2 %v568_v2  ;;  %v797_v57 = vld [vmem:[#allocation7 + $0x40] sm:$0xff]  ;;  %v856_v3 = vand.u32 4294901760, %v1838_v11 }
  0x75   :  { %672 = vmatpush.msra.mxu1 %v1681_v5  ;;  %v1855_v47 = vand.u32 4294901760, %v797_v57  ;;  %v1864_v21 = vsub.f32 %v798_v45, %v1844_v37  ;;  %812 = vmatpush.msrb.mxu0 %v1826_v29  ;;  %v1902_v34 = vsub.f32 %v795_v56, %v1891_v0  ;;  %v793_v45 = vld [vmem:[#allocation7 + $0x20] sm:$0xff] }
  0x76   :  { %772 = vmatpush.msra.mxu3 %v1626_v19  ;;  %741 = vmatpush.msra.mxu2 %v574_v20  ;;  %v1835_v19 = vsub.f32 %v804_v6, %v1822_v7  ;;  %v857_v63 = vsub.f32 %v1838_v11, %v856_v3  ;;  %v1889_v20 = vand.u32 4294901760, %v796_v40 }
  0x77   :  { %674 = vmatpush.msra.mxu1 %v1694_v28  ;;  %814 = vmatpush.msrb.mxu0 %v1828_v43  ;;  %v1882_v2 = vsub.f32 %v797_v57, %v1855_v47  ;;  %v886_v33 = vand.u32 4294901760, %v1864_v21 }
  0x78   :  { %774 = vmatpush.msra.mxu3 %v1642_v17  ;;  %745 = vmatpush.msra.mxu2 %v580_v31  ;;  %v858_v52 = vand.u32 4294901760, %v857_v63  ;;  %v1898_v1 = vsub.f32 %v796_v40, %v1889_v20  ;;  %v791_v40 = vld [vmem:[#allocation7 + $0x10] sm:$0xff] }
  0x79   :  { %816 = vmatpush.msrb.mxu0 %v1830_v24  ;;  %v892_v32 = vand.u32 4294901760, %v1882_v2 }
  0x7a   :  { %776 = vmatpush.msra.mxu3 %v1655_v22  ;;  %v1853_v22 = vsub.f32 %v799_v9, %v1832_v10  ;;  %v1942_v9 = vand.u32 4294901760, %v794_v41 }
  0x7b   :  { %818 = vmatpush.msrb.mxu0 %v1832_v10 }
  0x7c   :  { %778 = vmatpush.msra.mxu3 %v1668_v53  ;;  %v850_v53 = vand.u32 4294901760, %v1835_v19  ;;  %v880_v46 = vand.u32 4294901760, %v1853_v22  ;;  %v1945_v57 = vsub.f32 %v794_v41, %v1942_v9 }
  0x7d   :  { %820 = vmatpush.msrb.mxu0 %v1844_v37 }
  0x7e   :  { %780 = vmatpush.msra.mxu3 %v1681_v5  ;;  %v868_v5 = vand.u32 4294901760, %v1847_v38  ;;  %v851_v49 = vsub.f32 %v1835_v19, %v850_v53  ;;  %v881_v60 = vsub.f32 %v1853_v22, %v880_v46 }
  0x7f   :  { %822 = vmatpush.msrb.mxu0 %v1855_v47 }
  0x80   :  { %782 = vmatpush.msra.mxu3 %v1694_v28  ;;  %v863_v28 = vsub.f32 %v1841_v51, %v862_v42  ;;  %v852_v58 = vand.u32 4294901760, %v851_v49  ;;  %v869_v50 = vsub.f32 %v1847_v38, %v868_v5  ;;  %v910_v49 = vand.u32 4294901760, %v1945_v57 }
  0x81   :  { %824 = vmatpush.msrb.mxu0 %v1889_v20 }
  0x82   :  { %853 = vmatpush.msrb.mxu1 %v852_v58  ;;  %v864_v54 = vand.u32 4294901760, %v863_v28  ;;  %v870_v12 = vand.u32 4294901760, %v869_v50  ;;  %v911_v56 = vsub.f32 %v1945_v57, %v910_v49  ;;  %v1967_v50 = vand.u32 4294901760, %v791_v40 }
  0x83   :  { %826 = vmatpush.msrb.mxu0 %v1891_v0 }
  0x84   :  { %859 = vmatpush.msrb.mxu1 %v858_v52 }
  0x85   :  { %828 = vmatpush.msrb.mxu0 %v1942_v9 }
  0x86   :  { %865 = vmatpush.msrb.mxu1 %v864_v54  ;;  %v912_v54 = vand.u32 4294901760, %v911_v56 }
  0x88   :  { %871 = vmatpush.msrb.mxu1 %v870_v12  ;;  %v927_v12 = vsub.f32 %v791_v40, %v1967_v50 }
  0x8a   :  { %877 = vmatpush.msrb.mxu1 %v876_v36  ;;  %v789_v36 = vld [vmem:[#allocation7] sm:$0xff] }
  0xb1   :  { %v125_v23 = vpop.f32.mrf.mxu0 }
  0xb2   :  { %v126_v16 = vadd.f32 %v1174_v15, %v125_v23  ;;  %v887_v15 = vsub.f32 %v1864_v21, %v886_v33  ;;  %v898_v23 = vand.u32 4294901760, %v1898_v1 }
  0xb5   :  { %v226_v18 = vpop.f32.mrf.mxu1  ;;  %v319_v59 = vpop.f32.mrf.mxu3 }
  0xb6   :  { %v227_v26 = vadd.f32 %v226_v18, %v126_v16  ;;  %v882_v18 = vand.u32 4294901760, %v881_v60 }
  0xb7   :  { %v280_v55 = vpop.f32.mrf.mxu2 }
  0xb8   :  { %v281_v27 = vadd.f32 %v280_v55, %v227_v26  ;;  %v893_v26 = vsub.f32 %v1882_v2, %v892_v32  ;;  %v904_v55 = vand.u32 4294901760, %v1902_v34  ;;  %883 = vmatpush.msrb.mxu1 %v882_v18  ;;  %v928_v18 = vand.u32 4294901760, %v927_v12 }
  0xba   :  { %v320_v61 = vadd.f32 %v319_v59, %v281_v27  ;;  %v888_v59 = vand.u32 4294901760, %v887_v15  ;;  %v894_v6 = vand.u32 4294901760, %v893_v26  ;;  %v905_v4 = vsub.f32 %v1902_v34, %v904_v55 }
  0xbb   :  { %v837_v26 = vand.u32 4294901760, %v789_v36 }
  0xbc   :  { %889 = vmatpush.msrb.mxu1 %v888_v59  ;;  %v906_v30 = vand.u32 4294901760, %v905_v4 }
  0xbe   :  { %895 = vmatpush.msrb.mxu1 %v894_v6 }
  0xcd   :  { %v388_v62 = vpop.f32.mrf.mxu0 }
  0xce   :  { %v389_v39 = vadd.f32 %v388_v62, %v320_v61  ;;  %v899_v61 = vsub.f32 %v1898_v1, %v898_v23 }
  0xd5   :  { %v425_v17 = vpop.f32.mrf.mxu1 }
  0xd6   :  { %v426_v14 = vadd.f32 %v425_v17, %v389_v39  ;;  %v900_v39 = vand.u32 4294901760, %v899_v61  ;;  %v1947_v17 = vand.u32 4294901760, %v793_v45  ;;  %v929_v61 = vsub.f32 %v927_v12, %v928_v18 }
  0xd8   :  { %1177 = vtanh.f32 %v426_v14  ;;  %901 = vmatpush.msrb.mxu1 %v900_v39  ;;  %v792_v14 = vld [vmem:[#allocation7 + $0x18] sm:$0xff]  ;;  %v1953_v63 = vsub.f32 %v793_v45, %v1947_v17  ;;  %830 = vmatpush.msrb.mxu0 %v1947_v17  ;;  %v930_v4 = vand.u32 4294901760, %v929_v61 }
  0xd9   :  { %v1955_v28 = vand.u32 4294901760, %v792_v14 }
  0xda   :  { %907 = vmatpush.msrb.mxu1 %v906_v30  ;;  %v916_v58 = vand.u32 4294901760, %v1953_v63 }
  0xdb   :  { %v1965_v52 = vsub.f32 %v792_v14, %v1955_v28  ;;  %832 = vmatpush.msrb.mxu0 %v1955_v28 }
  0xdc   :  { %v917_v60 = vsub.f32 %v1953_v63, %v916_v58  ;;  %913 = vmatpush.msrb.mxu1 %v912_v54 }
  0xdd   :  { %834 = vmatpush.msrb.mxu0 %v1967_v50 }
  0xde   :  { %v1178_v31 = vpop.eup %1177  ;;  %v918_v15 = vand.u32 4294901760, %v917_v60 }
  0xdf   :  { %v479_v35 = vand.u32 4294901760, %v1178_v31 }
  0xe0   :  { %919 = vmatpush.msrb.mxu1 %v918_v15 }
  0xe1   :  { %585 = vmatmul.f32.vlgmr.msrb.gmra.mxu3 %v479_v35  ;;  %v480_v16 = vsub.f32 %v1178_v31, %v479_v35  ;;  %v922_v31 = vand.u32 4294901760, %v1965_v52 }
  0xe2   :  { %1004 = vmatpush.msrb.mxu3 %v1822_v7 }
  0xe3   :  { %639 = vmatmul.f32.vlgmr.msra.gmra.mxu0 %v480_v16  ;;  %v481_v27 = vand.u32 4294901760, %v480_v16 }
  0xe4   :  { %1006 = vmatpush.msrb.mxu3 %v1824_v13 }
  0xe5   :  { %678 = vmatmul.f32.vlgmr.msra.gmra.mxu1 %v481_v27  ;;  %v482_v62 = vsub.f32 %v480_v16, %v481_v27  ;;  %v923_v16 = vsub.f32 %v1965_v52, %v922_v31 }
  0xe6   :  { %1008 = vmatpush.msrb.mxu3 %v1826_v29 }
  0xe7   :  { %v483_v25 = vand.u32 4294901760, %v482_v62  ;;  %v924_v59 = vand.u32 4294901760, %v923_v16  ;;  %v939_v62 = vsub.f32 %v789_v36, %v837_v26 }
  0xe8   :  { %1010 = vmatpush.msrb.mxu3 %v1828_v43 }
  0xe9   :  { %484 = vmatmul.f32.vlgmr.msrb.gmra.mxu2 %v483_v25  ;;  %784 = vmatmul.f32.vlgmr.msra.gmra.mxu3 %v479_v35  ;;  %v940_v25 = vand.u32 4294901760, %v939_v62 }
  0xea   :  { %951 = vmatpush.msrb.mxu2 %v1835_v19  ;;  %1012 = vmatpush.msrb.mxu3 %v1830_v24 }
  0xeb   :  { %925 = vmatpush.msrb.mxu1 %v924_v59  ;;  %v941_v30 = vsub.f32 %v939_v62, %v940_v25 }
  0xec   :  { %954 = vmatpush.msrb.mxu2 %v1838_v11  ;;  %1014 = vmatpush.msrb.mxu3 %v1832_v10 }
  0xed   :  { %931 = vmatpush.msrb.mxu1 %v930_v4  ;;  %v942_v45 = vand.u32 4294901760, %v941_v30 }
  0xee   :  { %957 = vmatpush.msrb.mxu2 %v1841_v51  ;;  %1016 = vmatpush.msrb.mxu3 %v1844_v37 }
  0xf0   :  { %960 = vmatpush.msrb.mxu2 %v1847_v38  ;;  %1018 = vmatpush.msrb.mxu3 %v1855_v47 }
  0xf1   :  { %747 = vmatmul.f32.vlgmr.msra.gmra.mxu2 %v479_v35  ;;  %v835_v35 = vand.u32 4294901760, %v790_v8 }
  0xf2   :  { %963 = vmatpush.msrb.mxu2 %v1850_v48  ;;  %1020 = vmatpush.msrb.mxu3 %v1889_v20 }
  0xf3   :  { %v933_v27 = vsub.f32 %v790_v8, %v835_v35  ;;  %836 = vmatpush.msrb.mxu0 %v835_v35 }
  0xf4   :  { %966 = vmatpush.msrb.mxu2 %v1853_v22  ;;  %1022 = vmatpush.msrb.mxu3 %v1891_v0 }
  0xf5   :  { %v934_v6 = vand.u32 4294901760, %v933_v27  ;;  %838 = vmatpush.msrb.mxu0 %v837_v26 }
  0xf6   :  { %969 = vmatpush.msrb.mxu2 %v1864_v21  ;;  %1024 = vmatpush.msrb.mxu3 %v1942_v9  ;;  %v1176_v21 = vld [vmem:[%s2025_s1 + $0x2] ss:$0 sm:$0xff] }
  0xf7   :  { %1045 = vmatpush.msra.mxu0 %v850_v53  ;;  %v935_v39 = vsub.f32 %v933_v27, %v934_v6 }
  0xf8   :  { %972 = vmatpush.msrb.mxu2 %v1882_v2  ;;  %1026 = vmatpush.msrb.mxu3 %v1947_v17 }
  0xf9   :  { %1049 = vmatpush.msra.mxu0 %v856_v3  ;;  %v936_v41 = vand.u32 4294901760, %v935_v39 }
  0xfa   :  { %975 = vmatpush.msrb.mxu2 %v1898_v1  ;;  %1028 = vmatpush.msrb.mxu3 %v1955_v28 }
  0xfb   :  { %1053 = vmatpush.msra.mxu0 %v862_v42  ;;  %937 = vmatpush.msrb.mxu1 %v936_v41 }
  0xfc   :  { %978 = vmatpush.msrb.mxu2 %v1902_v34  ;;  %1030 = vmatpush.msrb.mxu3 %v1967_v50 }
  0xfd   :  { %1057 = vmatpush.msra.mxu0 %v868_v5  ;;  %943 = vmatpush.msrb.mxu1 %v942_v45 }
  0xfe   :  { %981 = vmatpush.msrb.mxu2 %v1945_v57  ;;  %1032 = vmatpush.msrb.mxu3 %v835_v35 }
  0xff   :  { %1112 = vmatpush.msra.mxu1 %v1822_v7  ;;  %1061 = vmatpush.msra.mxu0 %v874_v44  ;;  %v1175_v7 = vld [vmem:[%s2025_s1 + $0x1] ss:$0 sm:$0xff] }
 0x100   :  { %984 = vmatpush.msrb.mxu2 %v1953_v63  ;;  %1034 = vmatpush.msrb.mxu3 %v837_v26 }
 0x101   :  { %1114 = vmatpush.msra.mxu1 %v1824_v13  ;;  %1065 = vmatpush.msra.mxu0 %v880_v46 }
 0x102   :  { %987 = vmatpush.msrb.mxu2 %v1965_v52 }
 0x103   :  { %1116 = vmatpush.msra.mxu1 %v1826_v29  ;;  %1069 = vmatpush.msra.mxu0 %v886_v33 }
 0x104   :  { %990 = vmatpush.msrb.mxu2 %v927_v12 }
 0x105   :  { %1118 = vmatpush.msra.mxu1 %v1828_v43  ;;  %1073 = vmatpush.msra.mxu0 %v892_v32 }
 0x106   :  { %993 = vmatpush.msrb.mxu2 %v933_v27 }
 0x107   :  { %1120 = vmatpush.msra.mxu1 %v1830_v24  ;;  %1077 = vmatpush.msra.mxu0 %v898_v23 }
 0x108   :  { %996 = vmatpush.msrb.mxu2 %v939_v62 }
 0x109   :  { %1122 = vmatpush.msra.mxu1 %v1832_v10  ;;  %1081 = vmatpush.msra.mxu0 %v904_v55 }
 0x10b   :  { %1124 = vmatpush.msra.mxu1 %v1844_v37  ;;  %1085 = vmatpush.msra.mxu0 %v910_v49 }
 0x10d   :  { %1126 = vmatpush.msra.mxu1 %v1855_v47  ;;  %1089 = vmatpush.msra.mxu0 %v916_v58 }
 0x10f   :  { %1128 = vmatpush.msra.mxu1 %v1889_v20  ;;  %1093 = vmatpush.msra.mxu0 %v922_v31 }
 0x111   :  { %1130 = vmatpush.msra.mxu1 %v1891_v0  ;;  %1097 = vmatpush.msra.mxu0 %v928_v18 }
 0x113   :  { %1132 = vmatpush.msra.mxu1 %v1942_v9  ;;  %1101 = vmatpush.msra.mxu0 %v934_v6 }
 0x115   :  { %1134 = vmatpush.msra.mxu1 %v1947_v17  ;;  %1105 = vmatpush.msra.mxu0 %v940_v25 }
 0x117   :  { %1136 = vmatpush.msra.mxu1 %v1955_v28 }
 0x119   :  { %1138 = vmatpush.msra.mxu1 %v1967_v50 }
 0x11b   :  { %1140 = vmatpush.msra.mxu1 %v835_v35 }
 0x11d   :  { %1142 = vmatpush.msra.mxu1 %v837_v26 }
 0x160   :  { %v640_v10 = vpop.f32.mrf.mxu0 }
 0x162   :  { %v679_v11 = vpop.f32.mrf.mxu1 }
 0x164   :  { %v586_v13 = vpop.f32.mrf.mxu3 }
 0x16c   :  { %v485_v29 = vpop.f32.mrf.mxu2  ;;  %v785_v48 = vpop.f32.mrf.mxu3 }
 0x16d   :  { %v486_v43 = vadd.f32 %v1175_v7, %v485_v29 }
 0x16f   :  { %v587_v24 = vadd.f32 %v586_v13, %v486_v43 }
 0x171   :  { %v641_v19 = vadd.f32 %v640_v10, %v587_v24 }
 0x173   :  { %v680_v51 = vadd.f32 %v679_v11, %v641_v19 }
 0x174   :  { %v748_v37 = vpop.f32.mrf.mxu2 }
 0x175   :  { %v749_v38 = vadd.f32 %v748_v37, %v680_v51 }
 0x177   :  { %v786_v22 = vadd.f32 %v785_v48, %v749_v38 }
 0x179   :  { %1179 = vtanh.f32 %v786_v22 }
 0x17f   :  { %v1180_v47 = vpop.eup %1179 }
 0x180   :  { %v839_v53 = vand.u32 4294901760, %v1180_v47 }
 0x182   :  { %945 = vmatmul.f32.vlgmr.msrb.gmra.mxu1 %v839_v53  ;;  %v840_v3 = vsub.f32 %v1180_v47, %v839_v53 }
 0x184   :  { %999 = vmatmul.f32.vlgmr.msrb.gmra.mxu2 %v840_v3  ;;  %v841_v42 = vand.u32 4294901760, %v840_v3 }
 0x186   :  { %1038 = vmatmul.f32.vlgmr.msrb.gmra.mxu3 %v841_v42  ;;  %v842_v5 = vsub.f32 %v840_v3, %v841_v42 }
 0x188   :  { %v843_v44 = vand.u32 4294901760, %v842_v5 }
 0x18a   :  { %844 = vmatmul.f32.vlgmr.msrb.gmra.mxu0 %v843_v44  ;;  %1144 = vmatmul.f32.vlgmr.msra.gmra.mxu1 %v839_v53 }
 0x192   :  { %1107 = vmatmul.f32.vlgmr.msra.gmra.mxu0 %v839_v53 }
 0x1ff   :  { %v946_v46 = vpop.f32.mrf.mxu1 }
 0x207   :  { %v845_v2 = vpop.f32.mrf.mxu0  ;;  %v1000_v0 = vpop.f32.mrf.mxu2 }
 0x208   :  { %v846_v33 = vadd.f32 %v1176_v21, %v845_v2  ;;  %v1145_v9 = vpop.f32.mrf.mxu1 }
 0x209   :  { %v1039_v1 = vpop.f32.mrf.mxu3 }
 0x20a   :  { %v947_v20 = vadd.f32 %v946_v46, %v846_v33 }
 0x20c   :  { %v1001_v32 = vadd.f32 %v1000_v0, %v947_v20 }
 0x20e   :  { %v1040_v34 = vadd.f32 %v1039_v1, %v1001_v32 }
 0x20f   :  { %v1108_v23 = vpop.f32.mrf.mxu0 }
 0x210   :  { %v1109_v55 = vadd.f32 %v1108_v23, %v1040_v34 }
 0x212   :  { %v1146_v57 = vadd.f32 %v1145_v9, %v1109_v55 }
 0x214   :  { %1181 = vtanh.f32 %v1146_v57 }
 0x21a   :  { %v1182_v17 = vpop.eup %1181 }
 0x21b   :  { %1149 = vst [vmem:[#allocation8] sm:$0xff] %v1182_v17 }
 0x21c   :  { %1160 = dma.vmem_to_hbm [thread:$0]  %s1156_s15, 128, %s1158_s18, [#allocation4]  }
 0x21d   :  { %1283 = dma.done.wait [#allocation4], 128  }
 0x21e   :  { %1284 = vsyncadd [#allocation4], 4294967168 }
 0x21f   :  { %1165 = vsyncpa [#allocation3], 1 }
 0x220   :  { %1166 = vsyncpa [#allocation6], 1 }
 0x221   :  { %1167 = vsyncpa [#allocation4], 1 }

// kernel: fwd.1
= control target key start
LH: loop header
LB: loop body
LE: loop exit
PB: predicated region body
PF: predicated region fallthrough
CT: control target
= control target key end

     0   :  { %10 = vsyncpa [#allocation3], 0  ;;  %s2024_s0 = inlined_call_operand.vmem [shape: f32[8,128], index: 0, kind: input, shape index: {}]   ;;  %s2025_s1 = inlined_call_operand.vmem [shape: f32[3,128], index: 1, kind: input, shape index: {}]   ;;  %s2026_s2 = inlined_call_operand.hbm [shape: f32[128,128], index: 2, kind: input, shape index: {}]   ;;  %s2027_s3 = inlined_call_operand.hbm [shape: f32[128,128], index: 3, kind: input, shape index: {}]   ;;  %s2028_s4 = inlined_call_operand.hbm [shape: f32[128,128], index: 4, kind: input, shape index: {}]   ;;  %s2029_s5 = inlined_call_operand.hbm [shape: f32[8,128], index: 5, kind: output, shape index: {}]  }
   0x1   :  { %11 = vsyncpa [#allocation6], 0 }
   0x2   :  { %12 = vsyncpa [#allocation4], 0  ;;  %s34_s20 = sshll.u32 %s2027_s3, 4  ;;  %s1285_s21 = smov [#allocation5]   ;;  %s35_s20 = int_to_ptr.hbm [resolvable:$true] %s34_s20 }
   0x3   :  { %s36_s22 = sshll.u32 %s1285_s21, 4  ;;  %s21_s25 = sshll.u32 %s2026_s2, 4  ;;  %s37_s22 = int_to_ptr.vmem [resolvable:$true] %s36_s22  ;;  %s22_s25 = int_to_ptr.hbm [resolvable:$true] %s21_s25 }
   0x4   :  { %s1286_s26 = smov 128   ;;  %s1287_s27 = smov 8  }
   0x5   :  { %42 = dma.hbm_to_vmem [thread:$0]  %s35_s20, 2048, %s37_s22, [#allocation6], %s1286_s26, %s1286_s26, %s1287_s27  }
   0x6   :  { %s1288_s28 = smov [#allocation2]   ;;  %s47_s7 = sshll.u32 %s2028_s4, 4  ;;  %s48_s7 = int_to_ptr.hbm [resolvable:$true] %s47_s7 }
   0x7   :  { %s23_s29 = sshll.u32 %s1288_s28, 4  ;;  %s1289_s3 = smov [#allocation7]   ;;  %s24_s29 = int_to_ptr.vmem [resolvable:$true] %s23_s29 }
   0x8   :  { %29 = dma.hbm_to_vmem [thread:$0]  %s22_s25, 2048, %s24_s29, [#allocation3], %s1286_s26, %s1286_s26, %s1287_s27  }
   0x9   :  { %s49_s8 = sshll.u32 %s1289_s3, 4  ;;  %s50_s8 = int_to_ptr.vmem [resolvable:$true] %s49_s8 }
   0xa   :  { %55 = dma.hbm_to_vmem [thread:$0]  %s48_s7, 2048, %s50_s8, [#allocation6], %s1286_s26, %s1286_s26, %s1287_s27  }
   0xb   :  { %1279 = dma.done.wait [#allocation3], 2048  }
   0xc   :  { %1280 = vsyncadd [#allocation3], 4294965248 }
   0xd   :  { %1281 = dma.done.wait [#allocation6], 4096  }
   0xe   :  { %1282 = vsyncadd [#allocation6], 4294963200  ;;  %v84_v0 = vld [vmem:[#allocation2 + $0x78] sm:$0xff]  ;;  %v83_v1 = vld [vmem:[#allocation2 + $0x70] sm:$0xff]  ;;  %s1290_s14 = smov [#allocation8]   ;;  %s1157_s18 = sshll.u32 %s2029_s5, 4  ;;  %s1158_s18 = int_to_ptr.hbm [resolvable:$true] %s1157_s18 }
   0xf   :  { %v82_v2 = vld [vmem:[#allocation2 + $0x68] sm:$0xff]  ;;  %v1330_v3 = vand.u32 4294901760, %v84_v0  ;;  %v1332_v4 = vand.u32 4294901760, %v83_v1  ;;  %v81_v6 = vld [vmem:[#allocation2 + $0x60] sm:$0xff]  ;;  %v80_v7 = vld [vmem:[#allocation2 + $0x58] sm:$0xff]  ;;  %s1155_s15 = sshll.u32 %s1290_s14, 4  ;;  %s1156_s15 = int_to_ptr.vmem [resolvable:$true] %s1155_s15 }
  0x10   :  { %v1334_v5 = vand.u32 4294901760, %v82_v2  ;;  %v79_v8 = vld [vmem:[#allocation2 + $0x50] sm:$0xff]  ;;  %v1336_v9 = vand.u32 4294901760, %v81_v6  ;;  %v1338_v10 = vand.u32 4294901760, %v80_v7  ;;  %v78_v12 = vld [vmem:[#allocation2 + $0x48] sm:$0xff]  ;;  %v77_v13 = vld [vmem:[#allocation2 + $0x40] sm:$0xff] }
  0x11   :  { %v1340_v11 = vand.u32 4294901760, %v79_v8  ;;  %88 = vmatpush.msra.mxu0 %v1330_v3  ;;  %v1344_v14 = vsub.f32 %v84_v0, %v1330_v3  ;;  %v1347_v15 = vsub.f32 %v83_v1, %v1332_v4  ;;  %v1352_v17 = vand.u32 4294901760, %v78_v12  ;;  %284 = vmatpush.msra.mxu3 %v1330_v3  ;;  %v76_v21 = vld [vmem:[#allocation2 + $0x38] sm:$0xff]  ;;  %v75_v34 = vld [vmem:[#allocation2 + $0x30] sm:$0xff]  ;;  %v74_v35 = vld [vmem:[#allocation2 + $0x28] sm:$0xff] }
  0x12   :  { %v1350_v16 = vsub.f32 %v82_v2, %v1334_v5  ;;  %v1356_v18 = vsub.f32 %v81_v6, %v1336_v9  ;;  %v1359_v19 = vsub.f32 %v80_v7, %v1338_v10  ;;  %v1361_v20 = vand.u32 4294901760, %v77_v13  ;;  %v73_v42 = vld [vmem:[#allocation2 + $0x20] sm:$0xff]  ;;  %v72_v47 = vld [vmem:[#allocation2 + $0x18] sm:$0xff]  ;;  %v71_v53 = vld [vmem:[#allocation2 + $0x10] sm:$0xff] }
  0x13   :  { %90 = vmatpush.msra.mxu0 %v1332_v4  ;;  %v130_v22 = vand.u32 4294901760, %v1344_v14  ;;  %v136_v23 = vand.u32 4294901760, %v1347_v15  ;;  %v1368_v25 = vsub.f32 %v79_v8, %v1340_v11  ;;  %231 = vmatpush.msra.mxu2 %v1344_v14  ;;  %v1374_v28 = vsub.f32 %v78_v12, %v1352_v17  ;;  %v70_v61 = vld [vmem:[#allocation2 + $0x8] sm:$0xff]  ;;  %v69_v2 = vld [vmem:[#allocation2] sm:$0xff] }
  0x14   :  { %v142_v24 = vand.u32 4294901760, %v1350_v16  ;;  %v148_v26 = vand.u32 4294901760, %v1356_v18  ;;  %v154_v27 = vand.u32 4294901760, %v1359_v19  ;;  %286 = vmatpush.msra.mxu3 %v1332_v4  ;;  %v1387_v32 = vand.u32 4294901760, %v76_v21 }
  0x15   :  { %v131_v29 = vsub.f32 %v1344_v14, %v130_v22  ;;  %92 = vmatpush.msra.mxu0 %v1334_v5  ;;  %v137_v30 = vsub.f32 %v1347_v15, %v136_v23  ;;  %234 = vmatpush.msra.mxu2 %v1347_v15  ;;  %v1391_v33 = vsub.f32 %v77_v13, %v1361_v20  ;;  %v160_v39 = vand.u32 4294901760, %v1368_v25  ;;  %v444_v14 = vld [vmem:[#allocation5 + $0x78] sm:$0xff] }
  0x16   :  { %v143_v31 = vsub.f32 %v1350_v16, %v142_v24  ;;  %288 = vmatpush.msra.mxu3 %v1334_v5  ;;  %v149_v38 = vsub.f32 %v1356_v18, %v148_v26  ;;  %v155_v40 = vsub.f32 %v1359_v19, %v154_v27  ;;  %v166_v41 = vand.u32 4294901760, %v1374_v28 }
  0x17   :  { %v132_v36 = vand.u32 4294901760, %v131_v29  ;;  %v138_v37 = vand.u32 4294901760, %v137_v30  ;;  %94 = vmatpush.msra.mxu0 %v1336_v9  ;;  %237 = vmatpush.msra.mxu2 %v1350_v16  ;;  %v1406_v44 = vand.u32 4294901760, %v75_v34  ;;  %v1409_v45 = vsub.f32 %v76_v21, %v1387_v32  ;;  %v68_v29 = vld [vmem:[%s2024_s0] sm:$0xff] }
  0x18   :  { %290 = vmatpush.msra.mxu3 %v1336_v9  ;;  %v144_v43 = vand.u32 4294901760, %v143_v31  ;;  %v1411_v46 = vand.u32 4294901760, %v74_v35  ;;  %v172_v48 = vand.u32 4294901760, %v1391_v33  ;;  %v150_v49 = vand.u32 4294901760, %v149_v38 }
  0x19   :  { %133 = vmatpush.msra.mxu1 %v132_v36  ;;  %96 = vmatpush.msra.mxu0 %v1338_v10  ;;  %v161_v50 = vsub.f32 %v1368_v25, %v160_v39  ;;  %v1421_v51 = vsub.f32 %v75_v34, %v1406_v44  ;;  %v1423_v52 = vand.u32 4294901760, %v73_v42  ;;  %v1425_v54 = vand.u32 4294901760, %v72_v47 }
  0x1a   :  { %240 = vmatpush.msra.mxu2 %v1356_v18  ;;  %292 = vmatpush.msra.mxu3 %v1338_v10  ;;  %v156_v55 = vand.u32 4294901760, %v155_v40  ;;  %v167_v56 = vsub.f32 %v1374_v28, %v166_v41  ;;  %v178_v57 = vand.u32 4294901760, %v1409_v45  ;;  %v1435_v58 = vsub.f32 %v74_v35, %v1411_v46 }
  0x1b   :  { %139 = vmatpush.msra.mxu1 %v138_v37  ;;  %98 = vmatpush.msra.mxu0 %v1340_v11  ;;  %v173_v59 = vsub.f32 %v1391_v33, %v172_v48  ;;  %v1440_v60 = vand.u32 4294901760, %v71_v53  ;;  %v162_v62 = vand.u32 4294901760, %v161_v50  ;;  %v184_v63 = vand.u32 4294901760, %v1421_v51 }
  0x1c   :  { %243 = vmatpush.msra.mxu2 %v1359_v19  ;;  %294 = vmatpush.msra.mxu3 %v1340_v11  ;;  %v1447_v0 = vsub.f32 %v73_v42, %v1423_v52  ;;  %v1450_v1 = vsub.f32 %v72_v47, %v1425_v54  ;;  %v168_v6 = vand.u32 4294901760, %v167_v56  ;;  %v179_v7 = vsub.f32 %v1409_v45, %v178_v57  ;;  %v437_v19 = vld [vmem:[#allocation5 + $0x40] sm:$0xff] }
  0x1d   :  { %145 = vmatpush.msra.mxu1 %v144_v43  ;;  %100 = vmatpush.msra.mxu0 %v1352_v17  ;;  %v190_v8 = vand.u32 4294901760, %v1435_v58  ;;  %v1459_v12 = vand.u32 4294901760, %v70_v61  ;;  %v174_v13 = vand.u32 4294901760, %v173_v59  ;;  %v1462_v21 = vsub.f32 %v71_v53, %v1440_v60 }
  0x1e   :  { %246 = vmatpush.msra.mxu2 %v1368_v25  ;;  %296 = vmatpush.msra.mxu3 %v1352_v17  ;;  %v185_v30 = vsub.f32 %v1421_v51, %v184_v63  ;;  %v196_v31 = vand.u32 4294901760, %v1447_v0  ;;  %v1474_v34 = vand.u32 4294901760, %v69_v2  ;;  %v1476_v35 = vand.u32 4294901760, %v68_v29 }
  0x1f   :  { %151 = vmatpush.msra.mxu1 %v150_v49  ;;  %102 = vmatpush.msra.mxu0 %v1361_v20  ;;  %v202_v36 = vand.u32 4294901760, %v1450_v1  ;;  %v180_v37 = vand.u32 4294901760, %v179_v7  ;;  %v191_v38 = vsub.f32 %v1435_v58, %v190_v8  ;;  %v1486_v40 = vsub.f32 %v70_v61, %v1459_v12 }
  0x20   :  { %249 = vmatpush.msra.mxu2 %v1374_v28  ;;  %298 = vmatpush.msra.mxu3 %v1361_v20  ;;  %v120_v42 = vsub.f32 %v68_v29, %v1476_v35  ;;  %v186_v43 = vand.u32 4294901760, %v185_v30  ;;  %v197_v47 = vsub.f32 %v1447_v0, %v196_v31  ;;  %v208_v49 = vand.u32 4294901760, %v1462_v21 }
  0x21   :  { %157 = vmatpush.msra.mxu1 %v156_v55  ;;  %104 = vmatpush.msra.mxu0 %v1387_v32  ;;  %v1497_v50 = vsub.f32 %v69_v2, %v1474_v34  ;;  %v192_v53 = vand.u32 4294901760, %v191_v38  ;;  %v203_v55 = vsub.f32 %v1450_v1, %v202_v36  ;;  %v214_v56 = vand.u32 4294901760, %v1486_v40 }
  0x22   :  { %252 = vmatpush.msra.mxu2 %v1391_v33  ;;  %300 = vmatpush.msra.mxu3 %v1387_v32  ;;  %v121_v59 = vand.u32 4294901760, %v120_v42  ;;  %v198_v61 = vand.u32 4294901760, %v197_v47  ;;  %v442_v47 = vld [vmem:[#allocation5 + $0x68] sm:$0xff]  ;;  %v1539_v15 = vand.u32 4294901760, %v444_v14  ;;  %v436_v33 = vld [vmem:[#allocation5 + $0x38] sm:$0xff] }
  0x23   :  { %163 = vmatpush.msra.mxu1 %v162_v62  ;;  %106 = vmatpush.msra.mxu0 %v1406_v44  ;;  %v209_v62 = vsub.f32 %v1462_v21, %v208_v49  ;;  %v220_v2 = vand.u32 4294901760, %v1497_v50  ;;  %v215_v7 = vsub.f32 %v1486_v40, %v214_v56  ;;  %v1543_v16 = vand.u32 4294901760, %v442_v47 }
  0x24   :  { %255 = vmatpush.msra.mxu2 %v1409_v45  ;;  %302 = vmatpush.msra.mxu3 %v1406_v44  ;;  %v1618_v45 = vand.u32 4294901760, %v436_v33 }
  0x25   :  { %169 = vmatpush.msra.mxu1 %v168_v6  ;;  %108 = vmatpush.msra.mxu0 %v1411_v46  ;;  %v204_v6 = vand.u32 4294901760, %v203_v55  ;;  %v210_v29 = vand.u32 4294901760, %v209_v62  ;;  %v221_v30 = vsub.f32 %v1497_v50, %v220_v2 }
  0x26   :  { %258 = vmatpush.msra.mxu2 %v1421_v51  ;;  %304 = vmatpush.msra.mxu3 %v1411_v46  ;;  %v1633_v51 = vsub.f32 %v436_v33, %v1618_v45 }
  0x27   :  { %175 = vmatpush.msra.mxu1 %v174_v13  ;;  %110 = vmatpush.msra.mxu0 %v1423_v52  ;;  %v122_v13 = vsub.f32 %v120_v42, %v121_v59 }
  0x28   :  { %261 = vmatpush.msra.mxu2 %v1435_v58  ;;  %306 = vmatpush.msra.mxu3 %v1423_v52 }
  0x29   :  { %181 = vmatpush.msra.mxu1 %v180_v37  ;;  %112 = vmatpush.msra.mxu0 %v1425_v54  ;;  %v216_v37 = vand.u32 4294901760, %v215_v7  ;;  %v123_v38 = vand.u32 4294901760, %v122_v13  ;;  %v1579_v13 = vand.u32 4294901760, %v437_v19 }
  0x2a   :  { %264 = vmatpush.msra.mxu2 %v1447_v0  ;;  %308 = vmatpush.msra.mxu3 %v1425_v54  ;;  %v430_v0 = vld [vmem:[#allocation5 + $0x8] sm:$0xff] }
  0x2b   :  { %187 = vmatpush.msra.mxu1 %v186_v43  ;;  %114 = vmatpush.msra.mxu0 %v1440_v60  ;;  %v222_v43 = vand.u32 4294901760, %v221_v30 }
  0x2c   :  { %267 = vmatpush.msra.mxu2 %v1450_v1  ;;  %310 = vmatpush.msra.mxu3 %v1440_v60  ;;  %v429_v1 = vld [vmem:[#allocation5] sm:$0xff] }
  0x2d   :  { %193 = vmatpush.msra.mxu1 %v192_v53  ;;  %116 = vmatpush.msra.mxu0 %v1459_v12  ;;  %v439_v53 = vld [vmem:[#allocation5 + $0x50] sm:$0xff] }
  0x2e   :  { %270 = vmatpush.msra.mxu2 %v1462_v21  ;;  %312 = vmatpush.msra.mxu3 %v1459_v12  ;;  %v1550_v55 = vand.u32 4294901760, %v439_v53 }
  0x2f   :  { %199 = vmatpush.msra.mxu1 %v198_v61  ;;  %118 = vmatpush.msra.mxu0 %v1474_v34  ;;  %v1562_v61 = vsub.f32 %v442_v47, %v1543_v16 }
  0x30   :  { %273 = vmatpush.msra.mxu2 %v1486_v40  ;;  %314 = vmatpush.msra.mxu3 %v1474_v34  ;;  %v1584_v30 = vsub.f32 %v439_v53, %v1550_v55 }
  0x31   :  { %325 = vmatpush.msrb.mxu0 %v130_v22  ;;  %205 = vmatpush.msra.mxu1 %v204_v6  ;;  %v443_v22 = vld [vmem:[#allocation5 + $0x70] sm:$0xff]  ;;  %v502_v7 = vand.u32 4294901760, %v1562_v61 }
  0x32   :  { %276 = vmatpush.msra.mxu2 %v1497_v50  ;;  %318 = vmatmul.f32.vlgmr.msra.gmra.mxu3 %v121_v59 }
  0x33   :  { %329 = vmatpush.msrb.mxu0 %v136_v23  ;;  %211 = vmatpush.msra.mxu1 %v210_v29  ;;  %v1541_v23 = vand.u32 4294901760, %v443_v22 }
  0x34   :  { %279 = vmatmul.f32.vlgmr.msra.gmra.mxu2 %v120_v42  ;;  %124 = vmatmul.f32.vlgmr.msra.gmra.mxu0 %v123_v38  ;;  %v440_v42 = vld [vmem:[#allocation5 + $0x58] sm:$0xff] }
  0x35   :  { %333 = vmatpush.msrb.mxu0 %v142_v24  ;;  %217 = vmatpush.msra.mxu1 %v216_v37  ;;  %v441_v24 = vld [vmem:[#allocation5 + $0x60] sm:$0xff]  ;;  %v1559_v59 = vsub.f32 %v443_v22, %v1541_v23  ;;  %v503_v37 = vsub.f32 %v1562_v61, %v502_v7 }
  0x36   :  { %v1546_v18 = vand.u32 4294901760, %v441_v24  ;;  %448 = vmatpush.msrb.mxu2 %v1539_v15 }
  0x37   :  { %337 = vmatpush.msrb.mxu0 %v148_v26  ;;  %223 = vmatpush.msra.mxu1 %v222_v43  ;;  %v1548_v26 = vand.u32 4294901760, %v440_v42  ;;  %v1607_v43 = vsub.f32 %v437_v19, %v1579_v13  ;;  %v504_v53 = vand.u32 4294901760, %v503_v37 }
  0x38   :  { %225 = vmatmul.f32.vlgmr.msra.gmra.mxu1 %v1476_v35  ;;  %v1567_v6 = vsub.f32 %v441_v24, %v1546_v18  ;;  %450 = vmatpush.msrb.mxu2 %v1541_v23  ;;  %v520_v24 = vand.u32 4294901760, %v1584_v30 }
  0x39   :  { %392 = vmatpush.msrb.mxu1 %v1330_v3  ;;  %341 = vmatpush.msrb.mxu0 %v154_v27  ;;  %v438_v3 = vld [vmem:[#allocation5 + $0x48] sm:$0xff]  ;;  %v1556_v27 = vsub.f32 %v444_v14, %v1539_v15 }
  0x3a   :  { %v1564_v62 = vand.u32 4294901760, %v438_v3  ;;  %v508_v29 = vand.u32 4294901760, %v1567_v6  ;;  %452 = vmatpush.msrb.mxu2 %v1543_v16  ;;  %v434_v14 = vld [vmem:[#allocation5 + $0x28] sm:$0xff] }
  0x3b   :  { %394 = vmatpush.msrb.mxu1 %v1332_v4  ;;  %345 = vmatpush.msrb.mxu0 %v160_v39  ;;  %v1571_v4 = vsub.f32 %v440_v42, %v1548_v26  ;;  %v490_v25 = vand.u32 4294901760, %v1556_v27  ;;  %v496_v39 = vand.u32 4294901760, %v1559_v59  ;;  %v433_v42 = vld [vmem:[#allocation5 + $0x20] sm:$0xff]  ;;  %v1626_v19 = vand.u32 4294901760, %v434_v14 }
  0x3c   :  { %v509_v47 = vsub.f32 %v1567_v6, %v508_v29  ;;  %454 = vmatpush.msrb.mxu2 %v1546_v18 }
  0x3d   :  { %396 = vmatpush.msrb.mxu1 %v1334_v5  ;;  %349 = vmatpush.msrb.mxu0 %v166_v41  ;;  %v491_v5 = vsub.f32 %v1556_v27, %v490_v25  ;;  %v497_v28 = vsub.f32 %v1559_v59, %v496_v39  ;;  %v1596_v41 = vsub.f32 %v438_v3, %v1564_v62 }
  0x3e   :  { %456 = vmatpush.msrb.mxu2 %v1548_v26 }
  0x3f   :  { %398 = vmatpush.msrb.mxu1 %v1336_v9  ;;  %353 = vmatpush.msrb.mxu0 %v172_v48  ;;  %v514_v9 = vand.u32 4294901760, %v1571_v4  ;;  %v435_v48 = vld [vmem:[#allocation5 + $0x30] sm:$0xff]  ;;  %v492_v38 = vand.u32 4294901760, %v491_v5  ;;  %v498_v22 = vand.u32 4294901760, %v497_v28  ;;  %v510_v5 = vand.u32 4294901760, %v509_v47 }
  0x40   :  { %v521_v28 = vsub.f32 %v1584_v30, %v520_v24  ;;  %458 = vmatpush.msrb.mxu2 %v1550_v55 }
  0x41   :  { %400 = vmatpush.msrb.mxu1 %v1338_v10  ;;  %357 = vmatpush.msrb.mxu0 %v178_v57  ;;  %v526_v10 = vand.u32 4294901760, %v1596_v41  ;;  %v1620_v57 = vand.u32 4294901760, %v435_v48  ;;  %v515_v3 = vsub.f32 %v1571_v4, %v514_v9 }
  0x42   :  { %493 = vmatpush.msrb.mxu3 %v492_v38  ;;  %v538_v38 = vand.u32 4294901760, %v1633_v51  ;;  %460 = vmatpush.msrb.mxu2 %v1564_v62 }
  0x43   :  { %402 = vmatpush.msrb.mxu1 %v1340_v11  ;;  %361 = vmatpush.msrb.mxu0 %v184_v63  ;;  %v532_v11 = vand.u32 4294901760, %v1607_v43  ;;  %v432_v63 = vld [vmem:[#allocation5 + $0x18] sm:$0xff]  ;;  %v1640_v37 = vsub.f32 %v435_v48, %v1620_v57  ;;  %v527_v58 = vsub.f32 %v1596_v41, %v526_v10  ;;  %v516_v33 = vand.u32 4294901760, %v515_v3 }
  0x44   :  { %499 = vmatpush.msrb.mxu3 %v498_v22  ;;  %v1653_v48 = vsub.f32 %v434_v14, %v1626_v19  ;;  %v1655_v22 = vand.u32 4294901760, %v432_v63  ;;  %462 = vmatpush.msrb.mxu2 %v1579_v13 }
  0x45   :  { %404 = vmatpush.msrb.mxu1 %v1352_v17  ;;  %365 = vmatpush.msrb.mxu0 %v190_v8  ;;  %v1642_v17 = vand.u32 4294901760, %v433_v42  ;;  %v431_v8 = vld [vmem:[#allocation5 + $0x10] sm:$0xff]  ;;  %v544_v47 = vand.u32 4294901760, %v1640_v37 }
  0x46   :  { %505 = vmatpush.msrb.mxu3 %v504_v53  ;;  %v1668_v53 = vand.u32 4294901760, %v431_v8  ;;  %v550_v3 = vand.u32 4294901760, %v1653_v48  ;;  %464 = vmatpush.msrb.mxu2 %v1618_v45 }
  0x47   :  { %406 = vmatpush.msrb.mxu1 %v1361_v20  ;;  %369 = vmatpush.msrb.mxu0 %v196_v31  ;;  %v533_v20 = vsub.f32 %v1607_v43, %v532_v11  ;;  %v522_v31 = vand.u32 4294901760, %v521_v28  ;;  %v1666_v14 = vsub.f32 %v433_v42, %v1642_v17  ;;  %v1679_v42 = vsub.f32 %v432_v63, %v1655_v22 }
  0x48   :  { %511 = vmatpush.msrb.mxu3 %v510_v5  ;;  %v1681_v5 = vand.u32 4294901760, %v430_v0  ;;  %v545_v21 = vsub.f32 %v1640_v37, %v544_v47  ;;  %466 = vmatpush.msrb.mxu2 %v1620_v57  ;;  %v1692_v63 = vsub.f32 %v431_v8, %v1668_v53  ;;  %v1694_v28 = vand.u32 4294901760, %v429_v1 }
  0x49   :  { %408 = vmatpush.msrb.mxu1 %v1387_v32  ;;  %373 = vmatpush.msrb.mxu0 %v202_v36  ;;  %v528_v32 = vand.u32 4294901760, %v527_v58  ;;  %v539_v36 = vsub.f32 %v1633_v51, %v538_v38  ;;  %v551_v40 = vsub.f32 %v1653_v48, %v550_v3 }
  0x4a   :  { %517 = vmatpush.msrb.mxu3 %v516_v33  ;;  %v1705_v58 = vsub.f32 %v430_v0, %v1681_v5  ;;  %468 = vmatpush.msrb.mxu2 %v1626_v19  ;;  %v1715_v8 = vsub.f32 %v429_v1, %v1694_v28 }
  0x4b   :  { %410 = vmatpush.msrb.mxu1 %v1406_v44  ;;  %377 = vmatpush.msrb.mxu0 %v208_v49  ;;  %v534_v44 = vand.u32 4294901760, %v533_v20  ;;  %v556_v49 = vand.u32 4294901760, %v1666_v14 }
  0x4c   :  { %523 = vmatpush.msrb.mxu3 %v522_v31  ;;  %v574_v20 = vand.u32 4294901760, %v1705_v58  ;;  %470 = vmatpush.msrb.mxu2 %v1642_v17  ;;  %v580_v31 = vand.u32 4294901760, %v1715_v8 }
  0x4d   :  { %412 = vmatpush.msrb.mxu1 %v1411_v46  ;;  %381 = vmatpush.msrb.mxu0 %v214_v56  ;;  %v540_v46 = vand.u32 4294901760, %v539_v36  ;;  %v562_v56 = vand.u32 4294901760, %v1679_v42  ;;  %v557_v50 = vsub.f32 %v1666_v14, %v556_v49 }
  0x4e   :  { %529 = vmatpush.msrb.mxu3 %v528_v32  ;;  %472 = vmatpush.msrb.mxu2 %v1655_v22  ;;  %v575_v32 = vsub.f32 %v1705_v58, %v574_v20 }
  0x4f   :  { %414 = vmatpush.msrb.mxu1 %v1423_v52  ;;  %385 = vmatpush.msrb.mxu0 %v220_v2  ;;  %v546_v52 = vand.u32 4294901760, %v545_v21  ;;  %v568_v2 = vand.u32 4294901760, %v1692_v63  ;;  %v563_v33 = vsub.f32 %v1679_v42, %v562_v56  ;;  %v558_v0 = vand.u32 4294901760, %v557_v50 }
  0x50   :  { %387 = vmatmul.f32.vlgmr.msrb.gmra.mxu0 %v1476_v35  ;;  %535 = vmatpush.msrb.mxu3 %v534_v44 }
  0x51   :  { %416 = vmatpush.msrb.mxu1 %v1425_v54  ;;  %591 = vmatpush.msra.mxu0 %v1556_v27  ;;  %v552_v54 = vand.u32 4294901760, %v551_v40  ;;  %v796_v40 = vld [vmem:[#allocation7 + $0x38] sm:$0xff] }
  0x52   :  { %541 = vmatpush.msrb.mxu3 %v540_v46  ;;  %474 = vmatpush.msrb.mxu2 %v1668_v53 }
  0x53   :  { %418 = vmatpush.msrb.mxu1 %v1440_v60  ;;  %594 = vmatpush.msra.mxu0 %v1559_v59  ;;  %v569_v60 = vsub.f32 %v1692_v63, %v568_v2 }
  0x54   :  { %547 = vmatpush.msrb.mxu3 %v546_v52  ;;  %476 = vmatpush.msrb.mxu2 %v1681_v5 }
  0x55   :  { %420 = vmatpush.msrb.mxu1 %v1459_v12  ;;  %597 = vmatpush.msra.mxu0 %v1562_v61  ;;  %v564_v12 = vand.u32 4294901760, %v563_v33  ;;  %v570_v1 = vand.u32 4294901760, %v569_v60 }
  0x56   :  { %553 = vmatpush.msrb.mxu3 %v552_v54  ;;  %478 = vmatpush.msrb.mxu2 %v1694_v28 }
  0x57   :  { %422 = vmatpush.msrb.mxu1 %v1474_v34  ;;  %600 = vmatpush.msra.mxu0 %v1567_v6  ;;  %v581_v34 = vsub.f32 %v1715_v8, %v580_v31  ;;  %v804_v6 = vld [vmem:[#allocation7 + $0x78] sm:$0xff] }
  0x58   :  { %424 = vmatmul.f32.vlgmr.msrb.gmra.mxu1 %v1476_v35  ;;  %559 = vmatpush.msrb.mxu3 %v558_v0  ;;  %v576_v35 = vand.u32 4294901760, %v575_v32 }
  0x59   :  { %644 = vmatpush.msra.mxu1 %v1539_v15  ;;  %603 = vmatpush.msra.mxu0 %v1571_v4  ;;  %v582_v36 = vand.u32 4294901760, %v581_v34  ;;  %v803_v4 = vld [vmem:[#allocation7 + $0x70] sm:$0xff] }
  0x5a   :  { %565 = vmatpush.msrb.mxu3 %v564_v12  ;;  %685 = vmatpush.msra.mxu2 %v490_v25  ;;  %v802_v25 = vld [vmem:[#allocation7 + $0x68] sm:$0xff] }
  0x5b   :  { %646 = vmatpush.msra.mxu1 %v1541_v23  ;;  %606 = vmatpush.msra.mxu0 %v1584_v30  ;;  %v801_v30 = vld [vmem:[#allocation7 + $0x60] sm:$0xff] }
  0x5c   :  { %571 = vmatpush.msrb.mxu3 %v570_v1  ;;  %689 = vmatpush.msra.mxu2 %v496_v39 }
  0x5d   :  { %648 = vmatpush.msra.mxu1 %v1543_v16  ;;  %609 = vmatpush.msra.mxu0 %v1596_v41  ;;  %v800_v41 = vld [vmem:[#allocation7 + $0x58] sm:$0xff] }
  0x5e   :  { %577 = vmatpush.msrb.mxu3 %v576_v35  ;;  %693 = vmatpush.msra.mxu2 %v502_v7  ;;  %v1822_v7 = vand.u32 4294901760, %v804_v6 }
  0x5f   :  { %650 = vmatpush.msra.mxu1 %v1546_v18  ;;  %612 = vmatpush.msra.mxu0 %v1607_v43  ;;  %v1828_v43 = vand.u32 4294901760, %v801_v30 }
  0x60   :  { %583 = vmatpush.msrb.mxu3 %v582_v36  ;;  %697 = vmatpush.msra.mxu2 %v508_v29  ;;  %v1826_v29 = vand.u32 4294901760, %v802_v25 }
  0x61   :  { %652 = vmatpush.msra.mxu1 %v1548_v26  ;;  %615 = vmatpush.msra.mxu0 %v1633_v51 }
  0x62   :  { %752 = vmatpush.msra.mxu3 %v1539_v15  ;;  %701 = vmatpush.msra.mxu2 %v514_v9  ;;  %v1174_v15 = vld [vmem:[%s2025_s1] ss:$0 sm:$0xff]  ;;  %v799_v9 = vld [vmem:[#allocation7 + $0x50] sm:$0xff]  ;;  %v1841_v51 = vsub.f32 %v802_v25, %v1826_v29 }
  0x63   :  { %654 = vmatpush.msra.mxu1 %v1550_v55  ;;  %618 = vmatpush.msra.mxu0 %v1640_v37 }
  0x64   :  { %754 = vmatpush.msra.mxu3 %v1541_v23  ;;  %705 = vmatpush.msra.mxu2 %v520_v24  ;;  %v1830_v24 = vand.u32 4294901760, %v800_v41 }
  0x65   :  { %656 = vmatpush.msra.mxu1 %v1564_v62  ;;  %621 = vmatpush.msra.mxu0 %v1653_v48 }
  0x66   :  { %756 = vmatpush.msra.mxu3 %v1543_v16  ;;  %709 = vmatpush.msra.mxu2 %v526_v10  ;;  %v1832_v10 = vand.u32 4294901760, %v799_v9  ;;  %v1850_v48 = vsub.f32 %v800_v41, %v1830_v24  ;;  %v794_v41 = vld [vmem:[#allocation7 + $0x28] sm:$0xff] }
  0x67   :  { %658 = vmatpush.msra.mxu1 %v1579_v13  ;;  %624 = vmatpush.msra.mxu0 %v1666_v14 }
  0x68   :  { %758 = vmatpush.msra.mxu3 %v1546_v18  ;;  %713 = vmatpush.msra.mxu2 %v532_v11  ;;  %v874_v44 = vand.u32 4294901760, %v1850_v48 }
  0x69   :  { %660 = vmatpush.msra.mxu1 %v1618_v45  ;;  %627 = vmatpush.msra.mxu0 %v1679_v42  ;;  %v862_v42 = vand.u32 4294901760, %v1841_v51 }
  0x6a   :  { %760 = vmatpush.msra.mxu3 %v1548_v26  ;;  %717 = vmatpush.msra.mxu2 %v538_v38  ;;  %v1847_v38 = vsub.f32 %v801_v30, %v1828_v43 }
  0x6b   :  { %662 = vmatpush.msra.mxu1 %v1620_v57  ;;  %630 = vmatpush.msra.mxu0 %v1692_v63 }
  0x6c   :  { %762 = vmatpush.msra.mxu3 %v1550_v55  ;;  %721 = vmatpush.msra.mxu2 %v544_v47 }
  0x6d   :  { %664 = vmatpush.msra.mxu1 %v1626_v19  ;;  %633 = vmatpush.msra.mxu0 %v1705_v58 }
  0x6e   :  { %764 = vmatpush.msra.mxu3 %v1564_v62  ;;  %725 = vmatpush.msra.mxu2 %v550_v3 }
  0x6f   :  { %666 = vmatpush.msra.mxu1 %v1642_v17  ;;  %636 = vmatpush.msra.mxu0 %v1715_v8  ;;  %v875_v8 = vsub.f32 %v1850_v48, %v874_v44 }
  0x70   :  { %766 = vmatpush.msra.mxu3 %v1579_v13  ;;  %729 = vmatpush.msra.mxu2 %v556_v49  ;;  %v1824_v13 = vand.u32 4294901760, %v803_v4 }
  0x71   :  { %668 = vmatpush.msra.mxu1 %v1655_v22  ;;  %808 = vmatpush.msrb.mxu0 %v1822_v7  ;;  %v876_v36 = vand.u32 4294901760, %v875_v8  ;;  %v790_v8 = vld [vmem:[#allocation7 + $0x8] sm:$0xff] }
  0x72   :  { %768 = vmatpush.msra.mxu3 %v1618_v45  ;;  %733 = vmatpush.msra.mxu2 %v562_v56  ;;  %v798_v45 = vld [vmem:[#allocation7 + $0x48] sm:$0xff]  ;;  %v1838_v11 = vsub.f32 %v803_v4, %v1824_v13  ;;  %v795_v56 = vld [vmem:[#allocation7 + $0x30] sm:$0xff] }
  0x73   :  { %670 = vmatpush.msra.mxu1 %v1668_v53  ;;  %v1844_v37 = vand.u32 4294901760, %v798_v45  ;;  %810 = vmatpush.msrb.mxu0 %v1824_v13  ;;  %v1891_v0 = vand.u32 4294901760, %v795_v56 }
  0x74   :  { %770 = vmatpush.msra.mxu3 %v1620_v57  ;;  %737 = vmatpush.msra.mxu2 %v568_v2  ;;  %v797_v57 = vld [vmem:[#allocation7 + $0x40] sm:$0xff]  ;;  %v856_v3 = vand.u32 4294901760, %v1838_v11 }
  0x75   :  { %672 = vmatpush.msra.mxu1 %v1681_v5  ;;  %v1855_v47 = vand.u32 4294901760, %v797_v57  ;;  %v1864_v21 = vsub.f32 %v798_v45, %v1844_v37  ;;  %812 = vmatpush.msrb.mxu0 %v1826_v29  ;;  %v1902_v34 = vsub.f32 %v795_v56, %v1891_v0  ;;  %v793_v45 = vld [vmem:[#allocation7 + $0x20] sm:$0xff] }
  0x76   :  { %772 = vmatpush.msra.mxu3 %v1626_v19  ;;  %741 = vmatpush.msra.mxu2 %v574_v20  ;;  %v1835_v19 = vsub.f32 %v804_v6, %v1822_v7  ;;  %v857_v63 = vsub.f32 %v1838_v11, %v856_v3  ;;  %v1889_v20 = vand.u32 4294901760, %v796_v40 }
  0x77   :  { %674 = vmatpush.msra.mxu1 %v1694_v28  ;;  %814 = vmatpush.msrb.mxu0 %v1828_v43  ;;  %v1882_v2 = vsub.f32 %v797_v57, %v1855_v47  ;;  %v886_v33 = vand.u32 4294901760, %v1864_v21 }
  0x78   :  { %774 = vmatpush.msra.mxu3 %v1642_v17  ;;  %745 = vmatpush.msra.mxu2 %v580_v31  ;;  %v858_v52 = vand.u32 4294901760, %v857_v63  ;;  %v1898_v1 = vsub.f32 %v796_v40, %v1889_v20  ;;  %v791_v40 = vld [vmem:[#allocation7 + $0x10] sm:$0xff] }
  0x79   :  { %816 = vmatpush.msrb.mxu0 %v1830_v24  ;;  %v892_v32 = vand.u32 4294901760, %v1882_v2 }
  0x7a   :  { %776 = vmatpush.msra.mxu3 %v1655_v22  ;;  %v1853_v22 = vsub.f32 %v799_v9, %v1832_v10  ;;  %v1942_v9 = vand.u32 4294901760, %v794_v41 }
  0x7b   :  { %818 = vmatpush.msrb.mxu0 %v1832_v10 }
  0x7c   :  { %778 = vmatpush.msra.mxu3 %v1668_v53  ;;  %v850_v53 = vand.u32 4294901760, %v1835_v19  ;;  %v880_v46 = vand.u32 4294901760, %v1853_v22  ;;  %v1945_v57 = vsub.f32 %v794_v41, %v1942_v9 }
  0x7d   :  { %820 = vmatpush.msrb.mxu0 %v1844_v37 }
  0x7e   :  { %780 = vmatpush.msra.mxu3 %v1681_v5  ;;  %v868_v5 = vand.u32 4294901760, %v1847_v38  ;;  %v851_v49 = vsub.f32 %v1835_v19, %v850_v53  ;;  %v881_v60 = vsub.f32 %v1853_v22, %v880_v46 }
  0x7f   :  { %822 = vmatpush.msrb.mxu0 %v1855_v47 }
  0x80   :  { %782 = vmatpush.msra.mxu3 %v1694_v28  ;;  %v863_v28 = vsub.f32 %v1841_v51, %v862_v42  ;;  %v852_v58 = vand.u32 4294901760, %v851_v49  ;;  %v869_v50 = vsub.f32 %v1847_v38, %v868_v5  ;;  %v910_v49 = vand.u32 4294901760, %v1945_v57 }
  0x81   :  { %824 = vmatpush.msrb.mxu0 %v1889_v20 }
  0x82   :  { %853 = vmatpush.msrb.mxu1 %v852_v58  ;;  %v864_v54 = vand.u32 4294901760, %v863_v28  ;;  %v870_v12 = vand.u32 4294901760, %v869_v50  ;;  %v911_v56 = vsub.f32 %v1945_v57, %v910_v49  ;;  %v1967_v50 = vand.u32 4294901760, %v791_v40 }
  0x83   :  { %826 = vmatpush.msrb.mxu0 %v1891_v0 }
  0x84   :  { %859 = vmatpush.msrb.mxu1 %v858_v52 }
  0x85   :  { %828 = vmatpush.msrb.mxu0 %v1942_v9 }
  0x86   :  { %865 = vmatpush.msrb.mxu1 %v864_v54  ;;  %v912_v54 = vand.u32 4294901760, %v911_v56 }
  0x88   :  { %871 = vmatpush.msrb.mxu1 %v870_v12  ;;  %v927_v12 = vsub.f32 %v791_v40, %v1967_v50 }
  0x8a   :  { %877 = vmatpush.msrb.mxu1 %v876_v36  ;;  %v789_v36 = vld [vmem:[#allocation7] sm:$0xff] }
  0xb1   :  { %v125_v23 = vpop.f32.mrf.mxu0 }
  0xb2   :  { %v126_v16 = vadd.f32 %v1174_v15, %v125_v23  ;;  %v887_v15 = vsub.f32 %v1864_v21, %v886_v33  ;;  %v898_v23 = vand.u32 4294901760, %v1898_v1 }
  0xb5   :  { %v226_v18 = vpop.f32.mrf.mxu1  ;;  %v319_v59 = vpop.f32.mrf.mxu3 }
  0xb6   :  { %v227_v26 = vadd.f32 %v226_v18, %v126_v16  ;;  %v882_v18 = vand.u32 4294901760, %v881_v60 }
  0xb7   :  { %v280_v55 = vpop.f32.mrf.mxu2 }
  0xb8   :  { %v281_v27 = vadd.f32 %v280_v55, %v227_v26  ;;  %v893_v26 = vsub.f32 %v1882_v2, %v892_v32  ;;  %v904_v55 = vand.u32 4294901760, %v1902_v34  ;;  %883 = vmatpush.msrb.mxu1 %v882_v18  ;;  %v928_v18 = vand.u32 4294901760, %v927_v12 }
  0xba   :  { %v320_v61 = vadd.f32 %v319_v59, %v281_v27  ;;  %v888_v59 = vand.u32 4294901760, %v887_v15  ;;  %v894_v6 = vand.u32 4294901760, %v893_v26  ;;  %v905_v4 = vsub.f32 %v1902_v34, %v904_v55 }
  0xbb   :  { %v837_v26 = vand.u32 4294901760, %v789_v36 }
  0xbc   :  { %889 = vmatpush.msrb.mxu1 %v888_v59  ;;  %v906_v30 = vand.u32 4294901760, %v905_v4 }
  0xbe   :  { %895 = vmatpush.msrb.mxu1 %v894_v6 }
  0xcd   :  { %v388_v62 = vpop.f32.mrf.mxu0 }
  0xce   :  { %v389_v39 = vadd.f32 %v388_v62, %v320_v61  ;;  %v899_v61 = vsub.f32 %v1898_v1, %v898_v23 }
  0xd5   :  { %v425_v17 = vpop.f32.mrf.mxu1 }
  0xd6   :  { %v426_v14 = vadd.f32 %v425_v17, %v389_v39  ;;  %v900_v39 = vand.u32 4294901760, %v899_v61  ;;  %v1947_v17 = vand.u32 4294901760, %v793_v45  ;;  %v929_v61 = vsub.f32 %v927_v12, %v928_v18 }
  0xd8   :  { %1177 = vtanh.f32 %v426_v14  ;;  %901 = vmatpush.msrb.mxu1 %v900_v39  ;;  %v792_v14 = vld [vmem:[#allocation7 + $0x18] sm:$0xff]  ;;  %v1953_v63 = vsub.f32 %v793_v45, %v1947_v17  ;;  %830 = vmatpush.msrb.mxu0 %v1947_v17  ;;  %v930_v4 = vand.u32 4294901760, %v929_v61 }
  0xd9   :  { %v1955_v28 = vand.u32 4294901760, %v792_v14 }
  0xda   :  { %907 = vmatpush.msrb.mxu1 %v906_v30  ;;  %v916_v58 = vand.u32 4294901760, %v1953_v63 }
  0xdb   :  { %v1965_v52 = vsub.f32 %v792_v14, %v1955_v28  ;;  %832 = vmatpush.msrb.mxu0 %v1955_v28 }
  0xdc   :  { %v917_v60 = vsub.f32 %v1953_v63, %v916_v58  ;;  %913 = vmatpush.msrb.mxu1 %v912_v54 }
  0xdd   :  { %834 = vmatpush.msrb.mxu0 %v1967_v50 }
  0xde   :  { %v1178_v31 = vpop.eup %1177  ;;  %v918_v15 = vand.u32 4294901760, %v917_v60 }
  0xdf   :  { %v479_v35 = vand.u32 4294901760, %v1178_v31 }
  0xe0   :  { %919 = vmatpush.msrb.mxu1 %v918_v15 }
  0xe1   :  { %585 = vmatmul.f32.vlgmr.msrb.gmra.mxu3 %v479_v35  ;;  %v480_v16 = vsub.f32 %v1178_v31, %v479_v35  ;;  %v922_v31 = vand.u32 4294901760, %v1965_v52 }
  0xe2   :  { %1004 = vmatpush.msrb.mxu3 %v1822_v7 }
  0xe3   :  { %639 = vmatmul.f32.vlgmr.msra.gmra.mxu0 %v480_v16  ;;  %v481_v27 = vand.u32 4294901760, %v480_v16 }
  0xe4   :  { %1006 = vmatpush.msrb.mxu3 %v1824_v13 }
  0xe5   :  { %678 = vmatmul.f32.vlgmr.msra.gmra.mxu1 %v481_v27  ;;  %v482_v62 = vsub.f32 %v480_v16, %v481_v27  ;;  %v923_v16 = vsub.f32 %v1965_v52, %v922_v31 }
  0xe6   :  { %1008 = vmatpush.msrb.mxu3 %v1826_v29 }
  0xe7   :  { %v483_v25 = vand.u32 4294901760, %v482_v62  ;;  %v924_v59 = vand.u32 4294901760, %v923_v16  ;;  %v939_v62 = vsub.f32 %v789_v36, %v837_v26 }
  0xe8   :  { %1010 = vmatpush.msrb.mxu3 %v1828_v43 }
  0xe9   :  { %484 = vmatmul.f32.vlgmr.msrb.gmra.mxu2 %v483_v25  ;;  %784 = vmatmul.f32.vlgmr.msra.gmra.mxu3 %v479_v35  ;;  %v940_v25 = vand.u32 4294901760, %v939_v62 }
  0xea   :  { %951 = vmatpush.msrb.mxu2 %v1835_v19  ;;  %1012 = vmatpush.msrb.mxu3 %v1830_v24 }
  0xeb   :  { %925 = vmatpush.msrb.mxu1 %v924_v59  ;;  %v941_v30 = vsub.f32 %v939_v62, %v940_v25 }
  0xec   :  { %954 = vmatpush.msrb.mxu2 %v1838_v11  ;;  %1014 = vmatpush.msrb.mxu3 %v1832_v10 }
  0xed   :  { %931 = vmatpush.msrb.mxu1 %v930_v4  ;;  %v942_v45 = vand.u32 4294901760, %v941_v30 }
  0xee   :  { %957 = vmatpush.msrb.mxu2 %v1841_v51  ;;  %1016 = vmatpush.msrb.mxu3 %v1844_v37 }
  0xf0   :  { %960 = vmatpush.msrb.mxu2 %v1847_v38  ;;  %1018 = vmatpush.msrb.mxu3 %v1855_v47 }
  0xf1   :  { %747 = vmatmul.f32.vlgmr.msra.gmra.mxu2 %v479_v35  ;;  %v835_v35 = vand.u32 4294901760, %v790_v8 }
  0xf2   :  { %963 = vmatpush.msrb.mxu2 %v1850_v48  ;;  %1020 = vmatpush.msrb.mxu3 %v1889_v20 }
  0xf3   :  { %v933_v27 = vsub.f32 %v790_v8, %v835_v35  ;;  %836 = vmatpush.msrb.mxu0 %v835_v35 }
  0xf4   :  { %966 = vmatpush.msrb.mxu2 %v1853_v22  ;;  %1022 = vmatpush.msrb.mxu3 %v1891_v0 }
  0xf5   :  { %v934_v6 = vand.u32 4294901760, %v933_v27  ;;  %838 = vmatpush.msrb.mxu0 %v837_v26 }
  0xf6   :  { %969 = vmatpush.msrb.mxu2 %v1864_v21  ;;  %1024 = vmatpush.msrb.mxu3 %v1942_v9  ;;  %v1176_v21 = vld [vmem:[%s2025_s1 + $0x2] ss:$0 sm:$0xff] }
  0xf7   :  { %1045 = vmatpush.msra.mxu0 %v850_v53  ;;  %v935_v39 = vsub.f32 %v933_v27, %v934_v6 }
  0xf8   :  { %972 = vmatpush.msrb.mxu2 %v1882_v2  ;;  %1026 = vmatpush.msrb.mxu3 %v1947_v17 }
  0xf9   :  { %1049 = vmatpush.msra.mxu0 %v856_v3  ;;  %v936_v41 = vand.u32 4294901760, %v935_v39 }
  0xfa   :  { %975 = vmatpush.msrb.mxu2 %v1898_v1  ;;  %1028 = vmatpush.msrb.mxu3 %v1955_v28 }
  0xfb   :  { %1053 = vmatpush.msra.mxu0 %v862_v42  ;;  %937 = vmatpush.msrb.mxu1 %v936_v41 }
  0xfc   :  { %978 = vmatpush.msrb.mxu2 %v1902_v34  ;;  %1030 = vmatpush.msrb.mxu3 %v1967_v50 }
  0xfd   :  { %1057 = vmatpush.msra.mxu0 %v868_v5  ;;  %943 = vmatpush.msrb.mxu1 %v942_v45 }
  0xfe   :  { %981 = vmatpush.msrb.mxu2 %v1945_v57  ;;  %1032 = vmatpush.msrb.mxu3 %v835_v35 }
  0xff   :  { %1112 = vmatpush.msra.mxu1 %v1822_v7  ;;  %1061 = vmatpush.msra.mxu0 %v874_v44  ;;  %v1175_v7 = vld [vmem:[%s2025_s1 + $0x1] ss:$0 sm:$0xff] }
 0x100   :  { %984 = vmatpush.msrb.mxu2 %v1953_v63  ;;  %1034 = vmatpush.msrb.mxu3 %v837_v26 }
 0x101   :  { %1114 = vmatpush.msra.mxu1 %v1824_v13  ;;  %1065 = vmatpush.msra.mxu0 %v880_v46 }
 0x102   :  { %987 = vmatpush.msrb.mxu2 %v1965_v52 }
 0x103   :  { %1116 = vmatpush.msra.mxu1 %v1826_v29  ;;  %1069 = vmatpush.msra.mxu0 %v886_v33 }
 0x104   :  { %990 = vmatpush.msrb.mxu2 %v927_v12 }
 0x105   :  { %1118 = vmatpush.msra.mxu1 %v1828_v43  ;;  %1073 = vmatpush.msra.mxu0 %v892_v32 }
 0x106   :  { %993 = vmatpush.msrb.mxu2 %v933_v27 }
 0x107   :  { %1120 = vmatpush.msra.mxu1 %v1830_v24  ;;  %1077 = vmatpush.msra.mxu0 %v898_v23 }
 0x108   :  { %996 = vmatpush.msrb.mxu2 %v939_v62 }
 0x109   :  { %1122 = vmatpush.msra.mxu1 %v1832_v10  ;;  %1081 = vmatpush.msra.mxu0 %v904_v55 }
 0x10b   :  { %1124 = vmatpush.msra.mxu1 %v1844_v37  ;;  %1085 = vmatpush.msra.mxu0 %v910_v49 }
 0x10d   :  { %1126 = vmatpush.msra.mxu1 %v1855_v47  ;;  %1089 = vmatpush.msra.mxu0 %v916_v58 }
 0x10f   :  { %1128 = vmatpush.msra.mxu1 %v1889_v20  ;;  %1093 = vmatpush.msra.mxu0 %v922_v31 }
 0x111   :  { %1130 = vmatpush.msra.mxu1 %v1891_v0  ;;  %1097 = vmatpush.msra.mxu0 %v928_v18 }
 0x113   :  { %1132 = vmatpush.msra.mxu1 %v1942_v9  ;;  %1101 = vmatpush.msra.mxu0 %v934_v6 }
 0x115   :  { %1134 = vmatpush.msra.mxu1 %v1947_v17  ;;  %1105 = vmatpush.msra.mxu0 %v940_v25 }
 0x117   :  { %1136 = vmatpush.msra.mxu1 %v1955_v28 }
 0x119   :  { %1138 = vmatpush.msra.mxu1 %v1967_v50 }
 0x11b   :  { %1140 = vmatpush.msra.mxu1 %v835_v35 }
 0x11d   :  { %1142 = vmatpush.msra.mxu1 %v837_v26 }
 0x160   :  { %v640_v10 = vpop.f32.mrf.mxu0 }
 0x162   :  { %v679_v11 = vpop.f32.mrf.mxu1 }
 0x164   :  { %v586_v13 = vpop.f32.mrf.mxu3 }
 0x16c   :  { %v485_v29 = vpop.f32.mrf.mxu2  ;;  %v785_v48 = vpop.f32.mrf.mxu3 }
 0x16d   :  { %v486_v43 = vadd.f32 %v1175_v7, %v485_v29 }
 0x16f   :  { %v587_v24 = vadd.f32 %v586_v13, %v486_v43 }
 0x171   :  { %v641_v19 = vadd.f32 %v640_v10, %v587_v24 }
 0x173   :  { %v680_v51 = vadd.f32 %v679_v11, %v641_v19 }
 0x174   :  { %v748_v37 = vpop.f32.mrf.mxu2 }
 0x175   :  { %v749_v38 = vadd.f32 %v748_v37, %v680_v51 }
 0x177   :  { %v786_v22 = vadd.f32 %v785_v48, %v749_v38 }
 0x179   :  { %1179 = vtanh.f32 %v786_v22 }
 0x17f   :  { %v1180_v47 = vpop.eup %1179 }
 0x180   :  { %v839_v53 = vand.u32 4294901760, %v1180_v47 }
 0x182   :  { %945 = vmatmul.f32.vlgmr.msrb.gmra.mxu1 %v839_v53  ;;  %v840_v3 = vsub.f32 %v1180_v47, %v839_v53 }
 0x184   :  { %999 = vmatmul.f32.vlgmr.msrb.gmra.mxu2 %v840_v3  ;;  %v841_v42 = vand.u32 4294901760, %v840_v3 }
 0x186   :  { %1038 = vmatmul.f32.vlgmr.msrb.gmra.mxu3 %v841_v42  ;;  %v842_v5 = vsub.f32 %v840_v3, %v841_v42 }
 0x188   :  { %v843_v44 = vand.u32 4294901760, %v842_v5 }
 0x18a   :  { %844 = vmatmul.f32.vlgmr.msrb.gmra.mxu0 %v843_v44  ;;  %1144 = vmatmul.f32.vlgmr.msra.gmra.mxu1 %v839_v53 }
 0x192   :  { %1107 = vmatmul.f32.vlgmr.msra.gmra.mxu0 %v839_v53 }
 0x1ff   :  { %v946_v46 = vpop.f32.mrf.mxu1 }
 0x207   :  { %v845_v2 = vpop.f32.mrf.mxu0  ;;  %v1000_v0 = vpop.f32.mrf.mxu2 }
 0x208   :  { %v846_v33 = vadd.f32 %v1176_v21, %v845_v2  ;;  %v1145_v9 = vpop.f32.mrf.mxu1 }
 0x209   :  { %v1039_v1 = vpop.f32.mrf.mxu3 }
 0x20a   :  { %v947_v20 = vadd.f32 %v946_v46, %v846_v33 }
 0x20c   :  { %v1001_v32 = vadd.f32 %v1000_v0, %v947_v20 }
 0x20e   :  { %v1040_v34 = vadd.f32 %v1039_v1, %v1001_v32 }
 0x20f   :  { %v1108_v23 = vpop.f32.mrf.mxu0 }
 0x210   :  { %v1109_v55 = vadd.f32 %v1108_v23, %v1040_v34 }
 0x212   :  { %v1146_v57 = vadd.f32 %v1145_v9, %v1109_v55 }
 0x214   :  { %1181 = vtanh.f32 %v1146_v57 }
 0x21a   :  { %v1182_v17 = vpop.eup %1181 }
 0x21b   :  { %1149 = vst [vmem:[#allocation8] sm:$0xff] %v1182_v17 }
 0x21c   :  { %1160 = dma.vmem_to_hbm [thread:$0]  %s1156_s15, 128, %s1158_s18, [#allocation4]  }
 0x21d   :  { %1283 = dma.done.wait [#allocation4], 128  }
 0x21e   :  { %1284 = vsyncadd [#allocation4], 4294967168 }
 0x21f   :  { %1165 = vsyncpa [#allocation3], 1 }
 0x220   :  { %1166 = vsyncpa [#allocation6], 1 }
 0x221   :  { %1167 = vsyncpa [#allocation4], 1 }

</bundles_post_ra>
